<compile_context>
chip_gen: v7x
topology: tpu7x:2x2x1
jax: 0.10.0
libtpu: 0.0.40
codegen_flags: <defaults>
</compile_context>

<pallas_src>
import functools

import numpy as np
import jax
import jax.numpy as jnp
from jax.experimental import pallas as pl
from jax.experimental.pallas import tpu as pltpu

T = 24  # number of time slots (fixed by the module)


def _round_up(x, m):
    return ((x + m - 1) // m) * m


def _gru4_kernel(x_ref, a0_ref, a1_ref, a2_ref, c_ref, m1_ref, m3_ref, out_ref,
                 *, inv_eta_c):
    """All refs have the agent axis on lanes (last dim = blk, multiple of 128).

    x_ref : (24, blk)      total demand d_t
    a*_ref: (3, 24, blk)   one-hot cheapest / 2nd / 3rd source
    c_ref : (3, 24, blk)   constraints C^i
    m*_ref: (24, 24, blk)  X_m1 / X_m3, layout [t, j, agent]
    out   : (120, blk)     rows = [d_g+d_c | d_p | d_s | d_c | d_d] x 24
    """
    zero = jnp.float32(0.0)

    x = x_ref[...]                                    # (24, blk)
    c0, c1, c2 = c_ref[0], c_ref[1], c_ref[2]         # (24, blk) each
    a00, a01, a02 = a0_ref[0], a0_ref[1], a0_ref[2]
    a10, a11, a12 = a1_ref[0], a1_ref[1], a1_ref[2]
    a20, a21, a22 = a2_ref[0], a2_ref[1], a2_ref[2]

    # Greedy cascade: d_j = delta_j - relu(delta_j - remaining demand).
    delta0 = a00 * c0 + a01 * c1 + a02 * c2
    d0 = delta0 - jnp.maximum(delta0 - x, zero)
    rem = x - d0
    delta1 = a10 * c0 + a11 * c1 + a12 * c2
    d1 = delta1 - jnp.maximum(delta1 - rem, zero)
    rem = rem - d1
    delta2 = a20 * c0 + a21 * c1 + a22 * c2
    d2 = delta2 - jnp.maximum(delta2 - rem, zero)

    # Route each d_j back onto its source: 0 = discharge, 1 = PV, 2 = grid.
    d_d = a00 * d0 + a10 * d1 + a20 * d2              # (24, blk)
    d_p = a01 * d0 + a11 * d1 + a21 * d2
    d_g = a02 * d0 + a12 * d1 + a22 * d2

    # Store what is final already (reduces live values across the loop below).
    out_ref[T:2 * T, :] = d_p
    out_ref[4 * T:5 * T, :] = d_d

    # Contraction over the time axis t, accumulated so the live intermediate
    # stays at (24, blk):
    #   d_c[j, a] = (1/eta_c) * sum_t X_m1[a, t, j] * d_d[a, t]
    #   d_s[j, a] =             sum_t X_m3[a, t, j] * d_d[a, t]
    acc_c = m1_ref[0] * d_d[0:1, :]
    acc_s = m3_ref[0] * d_d[0:1, :]
    for t in range(1, T):
        dd_t = d_d[t:t + 1, :]                        # (1, blk)
        acc_c = acc_c + m1_ref[t] * dd_t
        acc_s = acc_s + m3_ref[t] * dd_t
    d_c = acc_c * jnp.float32(inv_eta_c)

    out_ref[0:T, :] = d_g + d_c
    out_ref[2 * T:3 * T, :] = acc_s                   # d_s
    out_ref[3 * T:4 * T, :] = d_c


def gru_module_4_forward(X, X_m1, X_m2, X_m3, C, eta_c, eta_d,
                         *, block_agents=512, min_grid_steps=8):
    """Pallas equivalent of gru_module_4.forward.

    Returns Y of shape (n_agents, 5, 24) = stack([d_g+d_c, d_p, d_s, d_c, d_d], 1).
    (eta_d is kept only for signature parity; the reference forward never uses it.)
    """
    del eta_d  # unused by the original forward pass
    a0, a1, a2 = X_m2
    f32 = jnp.float32
    X = jnp.asarray(X, f32)
    a0 = jnp.asarray(a0, f32)
    a1 = jnp.asarray(a1, f32)
    a2 = jnp.asarray(a2, f32)
    C = jnp.asarray(C, f32)
    X_m1 = jnp.asarray(X_m1, f32)
    X_m3 = jnp.asarray(X_m3, f32)

    n = X.shape[0]

    # Lane-dense block size: multiple of 128 agents, capped so the grid keeps
    # several steps (feeds both TensorCores / megacore) when n is large enough.
    blk_req = max(128, (int(block_agents) // 128) * 128)
    occ_cap = max(128, ((n // max(1, int(min_grid_steps))) // 128) * 128)
    blk = max(128, min(blk_req, occ_cap))
    n_pad = _round_up(max(n, 1), blk)
    pad = n_pad - n

    def prep(arr, perm):
        t = jnp.transpose(arr, perm)
        if pad:
            t = jnp.pad(t, [(0, 0)] * (t.ndim - 1) + [(0, pad)])
        return t

    xT = prep(X, (1, 0))            # (24, n_pad)
    a0T = prep(a0, (2, 1, 0))       # (3, 24, n_pad)
    a1T = prep(a1, (2, 1, 0))
    a2T = prep(a2, (2, 1, 0))
    cT = prep(C, (2, 1, 0))
    m1T = prep(X_m1, (1, 2, 0))     # (t, j, n_pad)
    m3T = prep(X_m3, (1, 2, 0))

    grid = (n_pad // blk,)
    kernel = functools.partial(_gru4_kernel, inv_eta_c=1.0 / float(eta_c))

    # Dense bytes/agent: X + 4*(24x3) + 2*(24x24) inputs + (5x24) output, f32.
    bytes_per_agent = 4 * (T + 4 * 3 * T + 2 * T * T + 5 * T)
    cost = pl.CostEstimate(flops=3400 * n_pad, transcendentals=0,
                           bytes_accessed=bytes_per_agent * n_pad)

    im2 = lambda i: (0, i)
    im3 = lambda i: (0, 0, i)

    out = pl.pallas_call(
        kernel,
        out_shape=jax.ShapeDtypeStruct((5 * T, n_pad), f32),
        grid_spec=pltpu.PrefetchScalarGridSpec(
            num_scalar_prefetch=0,
            grid=grid,
            in_specs=[
                pl.BlockSpec((T, blk), im2),        # X^T
                pl.BlockSpec((3, T, blk), im3),     # a_0
                pl.BlockSpec((3, T, blk), im3),     # a_1
                pl.BlockSpec((3, T, blk), im3),     # a_2
                pl.BlockSpec((3, T, blk), im3),     # C
                pl.BlockSpec((T, T, blk), im3),     # X_m1
                pl.BlockSpec((T, T, blk), im3),     # X_m3
            ],
            out_specs=pl.BlockSpec((5 * T, blk), im2),
        ),
        compiler_params=pltpu.CompilerParams(
            dimension_semantics=("parallel",),
            vmem_limit_bytes=32 * 1024 * 1024,
        ),
        cost_estimate=cost,
    )(xT, a0T, a1T, a2T, cT, m1T, m3T)

    # (120, n) -> (5, 24, n) -> (n, 5, 24); cheap layout plumbing in XLA.
    Y = out[:, :n].reshape(5, T, n).transpose(2, 0, 1)
    return Y


def _reference(X, X_m1, X_m2, X_m3, C, eta_c):
    """NumPy (float64) transcription of the PyTorch forward, for validation."""
    X = np.asarray(X, np.float64)
    a0, a1, a2 = (np.asarray(a, np.float64) for a in X_m2)
    C = np.asarray(C, np.float64)
    m1 = np.asarray(X_m1, np.float64)
    m3 = np.asarray(X_m3, np.float64)

    delta0 = np.sum(a0 * C, axis=2)
    d0 = delta0 - np.maximum(delta0 - X, 0.0)
    delta1 = np.sum(a1 * C, axis=2)
    d1 = delta1 - np.maximum(delta1 - (X - d0), 0.0)
    delta2 = np.sum(a2 * C, axis=2)
    d2 = delta2 - np.maximum(delta2 - (X - d0 - d1), 0.0)
    d_g = a0[:, :, 2] * d0 + a1[:, :, 2] * d1 + a2[:, :, 2] * d2
    d_p = a0[:, :, 1] * d0 + a1[:, :, 1] * d1 + a2[:, :, 1] * d2
    d_d = a0[:, :, 0] * d0 + a1[:, :, 0] * d1 + a2[:, :, 0] * d2
    d_c = np.sum(m1 * d_d[:, :, None] / eta_c, axis=1)
    d_s = np.sum(m3 * d_d[:, :, None], axis=1)
    return np.stack([d_g + d_c, d_p, d_s, d_c, d_d], axis=1)


if __name__ == "__main__":
    eta_c, eta_d = 0.9, 0.95

    def make_inputs(n_agents, case):
        key = jax.random.fold_in(jax.random.PRNGKey(0), case)
        ks = jax.random.split(key, 5)
        X = 5.0 * jax.random.uniform(ks[0], (n_agents, T), dtype=jnp.float32)
        C = 3.0 * jax.random.uniform(ks[1], (n_agents, T, 3), dtype=jnp.float32)
        X_m1 = jax.nn.one_hot(
            jax.random.randint(ks[2], (n_agents, T), 0, T), T, dtype=jnp.float32)
        X_m3 = jax.nn.one_hot(
            jax.random.randint(ks[3], (n_agents, T), 0, T), T, dtype=jnp.float32)
        order = jnp.argsort(jax.random.uniform(ks[4], (n_agents, T, 3)), axis=-1)
        a0 = jax.nn.one_hot(order[..., 0], 3, dtype=jnp.float32)
        a1 = jax.nn.one_hot(order[..., 1], 3, dtype=jnp.float32)
        a2 = jax.nn.one_hot(order[..., 2], 3, dtype=jnp.float32)
        return X, X_m1, (a0, a1, a2), X_m3, C

    # Case 1: tiny agent count -> padded up to a single 128-lane block.
    X, X_m1, X_m2, X_m3, C = make_inputs(4, 0)
    Y = jax.block_until_ready(
        gru_module_4_forward(X, X_m1, X_m2, X_m3, C, eta_c, eta_d))
    Y_ref = _reference(X, X_m1, X_m2, X_m3, C, eta_c)
    assert Y.shape == (4, 5, T)
    assert np.allclose(np.asarray(Y), Y_ref, rtol=1e-4, atol=1e-5)

    # Case 2: agent count not a multiple of the block -> padding + 3-step grid.
    X, X_m1, X_m2, X_m3, C = make_inputs(300, 1)
    Y = jax.block_until_ready(
        gru_module_4_forward(X, X_m1, X_m2, X_m3, C, eta_c, eta_d,
                             block_agents=128, min_grid_steps=1))
    Y_ref = _reference(X, X_m1, X_m2, X_m3, C, eta_c)
    assert Y.shape == (300, 5, T)
    assert np.allclose(np.asarray(Y), Y_ref, rtol=1e-4, atol=1e-5)

    print("KERNEL_OK")
</pallas_src>

<mosaic_0001>
module attributes {stable_mosaic.version = 11 : i64} {
  func.func @_gru4_kernel(%arg0: i32, %arg1: memref<24x128xf32, #tpu.memory_space<vmem>>, %arg2: memref<3x24x128xf32, #tpu.memory_space<vmem>>, %arg3: memref<3x24x128xf32, #tpu.memory_space<vmem>>, %arg4: memref<3x24x128xf32, #tpu.memory_space<vmem>>, %arg5: memref<3x24x128xf32, #tpu.memory_space<vmem>>, %arg6: memref<24x24x128xf32, #tpu.memory_space<vmem>>, %arg7: memref<24x24x128xf32, #tpu.memory_space<vmem>>, %arg8: memref<120x128xf32, #tpu.memory_space<vmem>>) attributes {dimension_semantics = [#tpu.dimension_semantics<parallel>], iteration_bounds = array<i64: 1>, scalar_prefetch = 0 : i64, scratch_operands = 0 : i64, tpu.core_type = #tpu.core_type<tc>, window_params = [{transform_indices = @transform_0, window_bounds = array<i64: 24, 128>}, {transform_indices = @transform_1, window_bounds = array<i64: 3, 24, 128>}, {transform_indices = @transform_2, window_bounds = array<i64: 3, 24, 128>}, {transform_indices = @transform_3, window_bounds = array<i64: 3, 24, 128>}, {transform_indices = @transform_4, window_bounds = array<i64: 3, 24, 128>}, {transform_indices = @transform_5, window_bounds = array<i64: 24, 24, 128>}, {transform_indices = @transform_6, window_bounds = array<i64: 24, 24, 128>}, {transform_indices = @transform_7, window_bounds = array<i64: 120, 128>}]} {
    %c0 = arith.constant 0 : index
    %c0_0 = arith.constant 0 : index
    %0 = vector.load %arg1[%c0, %c0_0] : memref<24x128xf32, #tpu.memory_space<vmem>>, vector<24x128xf32>
    %c0_1 = arith.constant 0 : index
    %c0_2 = arith.constant 0 : index
    %c0_3 = arith.constant 0 : index
    %1 = vector.load %arg5[%c0_1, %c0_2, %c0_3] : memref<3x24x128xf32, #tpu.memory_space<vmem>>, vector<1x24x128xf32>
    %2 = vector.shape_cast %1 : vector<1x24x128xf32> to vector<24x128xf32>
    %c1 = arith.constant 1 : index
    %c0_4 = arith.constant 0 : index
    %c0_5 = arith.constant 0 : index
    %3 = vector.load %arg5[%c1, %c0_4, %c0_5] : memref<3x24x128xf32, #tpu.memory_space<vmem>>, vector<1x24x128xf32>
    %4 = vector.shape_cast %3 : vector<1x24x128xf32> to vector<24x128xf32>
    %c2 = arith.constant 2 : index
    %c0_6 = arith.constant 0 : index
    %c0_7 = arith.constant 0 : index
    %5 = vector.load %arg5[%c2, %c0_6, %c0_7] : memref<3x24x128xf32, #tpu.memory_space<vmem>>, vector<1x24x128xf32>
    %6 = vector.shape_cast %5 : vector<1x24x128xf32> to vector<24x128xf32>
    %c0_8 = arith.constant 0 : index
    %c0_9 = arith.constant 0 : index
    %c0_10 = arith.constant 0 : index
    %7 = vector.load %arg2[%c0_8, %c0_9, %c0_10] : memref<3x24x128xf32, #tpu.memory_space<vmem>>, vector<1x24x128xf32>
    %8 = vector.shape_cast %7 : vector<1x24x128xf32> to vector<24x128xf32>
    %c1_11 = arith.constant 1 : index
    %c0_12 = arith.constant 0 : index
    %c0_13 = arith.constant 0 : index
    %9 = vector.load %arg2[%c1_11, %c0_12, %c0_13] : memref<3x24x128xf32, #tpu.memory_space<vmem>>, vector<1x24x128xf32>
    %10 = vector.shape_cast %9 : vector<1x24x128xf32> to vector<24x128xf32>
    %c2_14 = arith.constant 2 : index
    %c0_15 = arith.constant 0 : index
    %c0_16 = arith.constant 0 : index
    %11 = vector.load %arg2[%c2_14, %c0_15, %c0_16] : memref<3x24x128xf32, #tpu.memory_space<vmem>>, vector<1x24x128xf32>
    %12 = vector.shape_cast %11 : vector<1x24x128xf32> to vector<24x128xf32>
    %c0_17 = arith.constant 0 : index
    %c0_18 = arith.constant 0 : index
    %c0_19 = arith.constant 0 : index
    %13 = vector.load %arg3[%c0_17, %c0_18, %c0_19] : memref<3x24x128xf32, #tpu.memory_space<vmem>>, vector<1x24x128xf32>
    %14 = vector.shape_cast %13 : vector<1x24x128xf32> to vector<24x128xf32>
    %c1_20 = arith.constant 1 : index
    %c0_21 = arith.constant 0 : index
    %c0_22 = arith.constant 0 : index
    %15 = vector.load %arg3[%c1_20, %c0_21, %c0_22] : memref<3x24x128xf32, #tpu.memory_space<vmem>>, vector<1x24x128xf32>
    %16 = vector.shape_cast %15 : vector<1x24x128xf32> to vector<24x128xf32>
    %c2_23 = arith.constant 2 : index
    %c0_24 = arith.constant 0 : index
    %c0_25 = arith.constant 0 : index
    %17 = vector.load %arg3[%c2_23, %c0_24, %c0_25] : memref<3x24x128xf32, #tpu.memory_space<vmem>>, vector<1x24x128xf32>
    %18 = vector.shape_cast %17 : vector<1x24x128xf32> to vector<24x128xf32>
    %c0_26 = arith.constant 0 : index
    %c0_27 = arith.constant 0 : index
    %c0_28 = arith.constant 0 : index
    %19 = vector.load %arg4[%c0_26, %c0_27, %c0_28] : memref<3x24x128xf32, #tpu.memory_space<vmem>>, vector<1x24x128xf32>
    %20 = vector.shape_cast %19 : vector<1x24x128xf32> to vector<24x128xf32>
    %c1_29 = arith.constant 1 : index
    %c0_30 = arith.constant 0 : index
    %c0_31 = arith.constant 0 : index
    %21 = vector.load %arg4[%c1_29, %c0_30, %c0_31] : memref<3x24x128xf32, #tpu.memory_space<vmem>>, vector<1x24x128xf32>
    %22 = vector.shape_cast %21 : vector<1x24x128xf32> to vector<24x128xf32>
    %c2_32 = arith.constant 2 : index
    %c0_33 = arith.constant 0 : index
    %c0_34 = arith.constant 0 : index
    %23 = vector.load %arg4[%c2_32, %c0_33, %c0_34] : memref<3x24x128xf32, #tpu.memory_space<vmem>>, vector<1x24x128xf32>
    %24 = vector.shape_cast %23 : vector<1x24x128xf32> to vector<24x128xf32>
    %25 = arith.mulf %8, %2 : vector<24x128xf32>
    %26 = arith.mulf %10, %4 : vector<24x128xf32>
    %27 = arith.addf %25, %26 : vector<24x128xf32>
    %28 = arith.mulf %12, %6 : vector<24x128xf32>
    %29 = arith.addf %27, %28 : vector<24x128xf32>
    %30 = arith.subf %29, %0 : vector<24x128xf32>
    %cst = arith.constant 0.000000e+00 : f32
    %31 = vector.broadcast %cst : f32 to vector<24x128xf32>
    %32 = arith.maximumf %30, %31 : vector<24x128xf32>
    %33 = arith.subf %29, %32 : vector<24x128xf32>
    %34 = arith.subf %0, %33 : vector<24x128xf32>
    %35 = arith.mulf %14, %2 : vector<24x128xf32>
    %36 = arith.mulf %16, %4 : vector<24x128xf32>
    %37 = arith.addf %35, %36 : vector<24x128xf32>
    %38 = arith.mulf %18, %6 : vector<24x128xf32>
    %39 = arith.addf %37, %38 : vector<24x128xf32>
    %40 = arith.subf %39, %34 : vector<24x128xf32>
    %cst_35 = arith.constant 0.000000e+00 : f32
    %41 = vector.broadcast %cst_35 : f32 to vector<24x128xf32>
    %42 = arith.maximumf %40, %41 : vector<24x128xf32>
    %43 = arith.subf %39, %42 : vector<24x128xf32>
    %44 = arith.subf %34, %43 : vector<24x128xf32>
    %45 = arith.mulf %20, %2 : vector<24x128xf32>
    %46 = arith.mulf %22, %4 : vector<24x128xf32>
    %47 = arith.addf %45, %46 : vector<24x128xf32>
    %48 = arith.mulf %24, %6 : vector<24x128xf32>
    %49 = arith.addf %47, %48 : vector<24x128xf32>
    %50 = arith.subf %49, %44 : vector<24x128xf32>
    %cst_36 = arith.constant 0.000000e+00 : f32
    %51 = vector.broadcast %cst_36 : f32 to vector<24x128xf32>
    %52 = arith.maximumf %50, %51 : vector<24x128xf32>
    %53 = arith.subf %49, %52 : vector<24x128xf32>
    %54 = arith.mulf %8, %33 : vector<24x128xf32>
    %55 = arith.mulf %14, %43 : vector<24x128xf32>
    %56 = arith.addf %54, %55 : vector<24x128xf32>
    %57 = arith.mulf %20, %53 : vector<24x128xf32>
    %58 = arith.addf %56, %57 : vector<24x128xf32>
    %59 = arith.mulf %10, %33 : vector<24x128xf32>
    %60 = arith.mulf %16, %43 : vector<24x128xf32>
    %61 = arith.addf %59, %60 : vector<24x128xf32>
    %62 = arith.mulf %22, %53 : vector<24x128xf32>
    %63 = arith.addf %61, %62 : vector<24x128xf32>
    %64 = arith.mulf %12, %33 : vector<24x128xf32>
    %65 = arith.mulf %18, %43 : vector<24x128xf32>
    %66 = arith.addf %64, %65 : vector<24x128xf32>
    %67 = arith.mulf %24, %53 : vector<24x128xf32>
    %68 = arith.addf %66, %67 : vector<24x128xf32>
    %c24 = arith.constant 24 : index
    %c0_37 = arith.constant 0 : index
    %69 = vector.load %arg8[%c24, %c0_37] : memref<120x128xf32, #tpu.memory_space<vmem>>, vector<24x128xf32>
    tpu.vector_store %arg8[%c24, %c0_37], %63 {strides = array<i32>} : memref<120x128xf32, #tpu.memory_space<vmem>>, vector<24x128xf32>,
    %c96 = arith.constant 96 : index
    %c0_38 = arith.constant 0 : index
    %70 = vector.load %arg8[%c96, %c0_38] : memref<120x128xf32, #tpu.memory_space<vmem>>, vector<24x128xf32>
    tpu.vector_store %arg8[%c96, %c0_38], %58 {strides = array<i32>} : memref<120x128xf32, #tpu.memory_space<vmem>>, vector<24x128xf32>,
    %c0_39 = arith.constant 0 : index
    %c0_40 = arith.constant 0 : index
    %c0_41 = arith.constant 0 : index
    %71 = vector.load %arg6[%c0_39, %c0_40, %c0_41] : memref<24x24x128xf32, #tpu.memory_space<vmem>>, vector<1x24x128xf32>
    %72 = vector.shape_cast %71 : vector<1x24x128xf32> to vector<24x128xf32>
    %73 = vector.extract_strided_slice %58 {offsets = [0, 0], sizes = [1, 128], strides = [1, 1]} : vector<24x128xf32> to vector<1x128xf32>
    %74 = vector.broadcast %73 : vector<1x128xf32> to vector<24x128xf32>
    %75 = arith.mulf %72, %74 : vector<24x128xf32>
    %c0_42 = arith.constant 0 : index
    %c0_43 = arith.constant 0 : index
    %c0_44 = arith.constant 0 : index
    %76 = vector.load %arg7[%c0_42, %c0_43, %c0_44] : memref<24x24x128xf32, #tpu.memory_space<vmem>>, vector<1x24x128xf32>
    %77 = vector.shape_cast %76 : vector<1x24x128xf32> to vector<24x128xf32>
    %78 = vector.extract_strided_slice %58 {offsets = [0, 0], sizes = [1, 128], strides = [1, 1]} : vector<24x128xf32> to vector<1x128xf32>
    %79 = vector.broadcast %78 : vector<1x128xf32> to vector<24x128xf32>
    %80 = arith.mulf %77, %79 : vector<24x128xf32>
    %81 = vector.extract_strided_slice %58 {offsets = [1, 0], sizes = [1, 128], strides = [1, 1]} : vector<24x128xf32> to vector<1x128xf32>
    %c1_45 = arith.constant 1 : index
    %c0_46 = arith.constant 0 : index
    %c0_47 = arith.constant 0 : index
    %82 = vector.load %arg6[%c1_45, %c0_46, %c0_47] : memref<24x24x128xf32, #tpu.memory_space<vmem>>, vector<1x24x128xf32>
    %83 = vector.shape_cast %82 : vector<1x24x128xf32> to vector<24x128xf32>
    %84 = vector.broadcast %81 : vector<1x128xf32> to vector<24x128xf32>
    %85 = arith.mulf %83, %84 : vector<24x128xf32>
    %86 = arith.addf %75, %85 : vector<24x128xf32>
    %c1_48 = arith.constant 1 : index
    %c0_49 = arith.constant 0 : index
    %c0_50 = arith.constant 0 : index
    %87 = vector.load %arg7[%c1_48, %c0_49, %c0_50] : memref<24x24x128xf32, #tpu.memory_space<vmem>>, vector<1x24x128xf32>
    %88 = vector.shape_cast %87 : vector<1x24x128xf32> to vector<24x128xf32>
    %89 = vector.broadcast %81 : vector<1x128xf32> to vector<24x128xf32>
    %90 = arith.mulf %88, %89 : vector<24x128xf32>
    %91 = arith.addf %80, %90 : vector<24x128xf32>
    %92 = vector.extract_strided_slice %58 {offsets = [2, 0], sizes = [1, 128], strides = [1, 1]} : vector<24x128xf32> to vector<1x128xf32>
    %c2_51 = arith.constant 2 : index
    %c0_52 = arith.constant 0 : index
    %c0_53 = arith.constant 0 : index
    %93 = vector.load %arg6[%c2_51, %c0_52, %c0_53] : memref<24x24x128xf32, #tpu.memory_space<vmem>>, vector<1x24x128xf32>
    %94 = vector.shape_cast %93 : vector<1x24x128xf32> to vector<24x128xf32>
    %95 = vector.broadcast %92 : vector<1x128xf32> to vector<24x128xf32>
    %96 = arith.mulf %94, %95 : vector<24x128xf32>
    %97 = arith.addf %86, %96 : vector<24x128xf32>
    %c2_54 = arith.constant 2 : index
    %c0_55 = arith.constant 0 : index
    %c0_56 = arith.constant 0 : index
    %98 = vector.load %arg7[%c2_54, %c0_55, %c0_56] : memref<24x24x128xf32, #tpu.memory_space<vmem>>, vector<1x24x128xf32>
    %99 = vector.shape_cast %98 : vector<1x24x128xf32> to vector<24x128xf32>
    %100 = vector.broadcast %92 : vector<1x128xf32> to vector<24x128xf32>
    %101 = arith.mulf %99, %100 : vector<24x128xf32>
    %102 = arith.addf %91, %101 : vector<24x128xf32>
    %103 = vector.extract_strided_slice %58 {offsets = [3, 0], sizes = [1, 128], strides = [1, 1]} : vector<24x128xf32> to vector<1x128xf32>
    %c3 = arith.constant 3 : index
    %c0_57 = arith.constant 0 : index
    %c0_58 = arith.constant 0 : index
    %104 = vector.load %arg6[%c3, %c0_57, %c0_58] : memref<24x24x128xf32, #tpu.memory_space<vmem>>, vector<1x24x128xf32>
    %105 = vector.shape_cast %104 : vector<1x24x128xf32> to vector<24x128xf32>
    %106 = vector.broadcast %103 : vector<1x128xf32> to vector<24x128xf32>
    %107 = arith.mulf %105, %106 : vector<24x128xf32>
    %108 = arith.addf %97, %107 : vector<24x128xf32>
    %c3_59 = arith.constant 3 : index
    %c0_60 = arith.constant 0 : index
    %c0_61 = arith.constant 0 : index
    %109 = vector.load %arg7[%c3_59, %c0_60, %c0_61] : memref<24x24x128xf32, #tpu.memory_space<vmem>>, vector<1x24x128xf32>
    %110 = vector.shape_cast %109 : vector<1x24x128xf32> to vector<24x128xf32>
    %111 = vector.broadcast %103 : vector<1x128xf32> to vector<24x128xf32>
    %112 = arith.mulf %110, %111 : vector<24x128xf32>
    %113 = arith.addf %102, %112 : vector<24x128xf32>
    %114 = vector.extract_strided_slice %58 {offsets = [4, 0], sizes = [1, 128], strides = [1, 1]} : vector<24x128xf32> to vector<1x128xf32>
    %c4 = arith.constant 4 : index
    %c0_62 = arith.constant 0 : index
    %c0_63 = arith.constant 0 : index
    %115 = vector.load %arg6[%c4, %c0_62, %c0_63] : memref<24x24x128xf32, #tpu.memory_space<vmem>>, vector<1x24x128xf32>
    %116 = vector.shape_cast %115 : vector<1x24x128xf32> to vector<24x128xf32>
    %117 = vector.broadcast %114 : vector<1x128xf32> to vector<24x128xf32>
    %118 = arith.mulf %116, %117 : vector<24x128xf32>
    %119 = arith.addf %108, %118 : vector<24x128xf32>
    %c4_64 = arith.constant 4 : index
    %c0_65 = arith.constant 0 : index
    %c0_66 = arith.constant 0 : index
    %120 = vector.load %arg7[%c4_64, %c0_65, %c0_66] : memref<24x24x128xf32, #tpu.memory_space<vmem>>, vector<1x24x128xf32>
    %121 = vector.shape_cast %120 : vector<1x24x128xf32> to vector<24x128xf32>
    %122 = vector.broadcast %114 : vector<1x128xf32> to vector<24x128xf32>
    %123 = arith.mulf %121, %122 : vector<24x128xf32>
    %124 = arith.addf %113, %123 : vector<24x128xf32>
    %125 = vector.extract_strided_slice %58 {offsets = [5, 0], sizes = [1, 128], strides = [1, 1]} : vector<24x128xf32> to vector<1x128xf32>
    %c5 = arith.constant 5 : index
    %c0_67 = arith.constant 0 : index
    %c0_68 = arith.constant 0 : index
    %126 = vector.load %arg6[%c5, %c0_67, %c0_68] : memref<24x24x128xf32, #tpu.memory_space<vmem>>, vector<1x24x128xf32>
    %127 = vector.shape_cast %126 : vector<1x24x128xf32> to vector<24x128xf32>
    %128 = vector.broadcast %125 : vector<1x128xf32> to vector<24x128xf32>
    %129 = arith.mulf %127, %128 : vector<24x128xf32>
    %130 = arith.addf %119, %129 : vector<24x128xf32>
    %c5_69 = arith.constant 5 : index
    %c0_70 = arith.constant 0 : index
    %c0_71 = arith.constant 0 : index
    %131 = vector.load %arg7[%c5_69, %c0_70, %c0_71] : memref<24x24x128xf32, #tpu.memory_space<vmem>>, vector<1x24x128xf32>
    %132 = vector.shape_cast %131 : vector<1x24x128xf32> to vector<24x128xf32>
    %133 = vector.broadcast %125 : vector<1x128xf32> to vector<24x128xf32>
    %134 = arith.mulf %132, %133 : vector<24x128xf32>
    %135 = arith.addf %124, %134 : vector<24x128xf32>
    %136 = vector.extract_strided_slice %58 {offsets = [6, 0], sizes = [1, 128], strides = [1, 1]} : vector<24x128xf32> to vector<1x128xf32>
    %c6 = arith.constant 6 : index
    %c0_72 = arith.constant 0 : index
    %c0_73 = arith.constant 0 : index
    %137 = vector.load %arg6[%c6, %c0_72, %c0_73] : memref<24x24x128xf32, #tpu.memory_space<vmem>>, vector<1x24x128xf32>
    %138 = vector.shape_cast %137 : vector<1x24x128xf32> to vector<24x128xf32>
    %139 = vector.broadcast %136 : vector<1x128xf32> to vector<24x128xf32>
    %140 = arith.mulf %138, %139 : vector<24x128xf32>
    %141 = arith.addf %130, %140 : vector<24x128xf32>
    %c6_74 = arith.constant 6 : index
    %c0_75 = arith.constant 0 : index
    %c0_76 = arith.constant 0 : index
    %142 = vector.load %arg7[%c6_74, %c0_75, %c0_76] : memref<24x24x128xf32, #tpu.memory_space<vmem>>, vector<1x24x128xf32>
    %143 = vector.shape_cast %142 : vector<1x24x128xf32> to vector<24x128xf32>
    %144 = vector.broadcast %136 : vector<1x128xf32> to vector<24x128xf32>
    %145 = arith.mulf %143, %144 : vector<24x128xf32>
    %146 = arith.addf %135, %145 : vector<24x128xf32>
    %147 = vector.extract_strided_slice %58 {offsets = [7, 0], sizes = [1, 128], strides = [1, 1]} : vector<24x128xf32> to vector<1x128xf32>
    %c7 = arith.constant 7 : index
    %c0_77 = arith.constant 0 : index
    %c0_78 = arith.constant 0 : index
    %148 = vector.load %arg6[%c7, %c0_77, %c0_78] : memref<24x24x128xf32, #tpu.memory_space<vmem>>, vector<1x24x128xf32>
    %149 = vector.shape_cast %148 : vector<1x24x128xf32> to vector<24x128xf32>
    %150 = vector.broadcast %147 : vector<1x128xf32> to vector<24x128xf32>
    %151 = arith.mulf %149, %150 : vector<24x128xf32>
    %152 = arith.addf %141, %151 : vector<24x128xf32>
    %c7_79 = arith.constant 7 : index
    %c0_80 = arith.constant 0 : index
    %c0_81 = arith.constant 0 : index
    %153 = vector.load %arg7[%c7_79, %c0_80, %c0_81] : memref<24x24x128xf32, #tpu.memory_space<vmem>>, vector<1x24x128xf32>
    %154 = vector.shape_cast %153 : vector<1x24x128xf32> to vector<24x128xf32>
    %155 = vector.broadcast %147 : vector<1x128xf32> to vector<24x128xf32>
    %156 = arith.mulf %154, %155 : vector<24x128xf32>
    %157 = arith.addf %146, %156 : vector<24x128xf32>
    %158 = vector.extract_strided_slice %58 {offsets = [8, 0], sizes = [1, 128], strides = [1, 1]} : vector<24x128xf32> to vector<1x128xf32>
    %c8 = arith.constant 8 : index
    %c0_82 = arith.constant 0 : index
    %c0_83 = arith.constant 0 : index
    %159 = vector.load %arg6[%c8, %c0_82, %c0_83] : memref<24x24x128xf32, #tpu.memory_space<vmem>>, vector<1x24x128xf32>
    %160 = vector.shape_cast %159 : vector<1x24x128xf32> to vector<24x128xf32>
    %161 = vector.broadcast %158 : vector<1x128xf32> to vector<24x128xf32>
    %162 = arith.mulf %160, %161 : vector<24x128xf32>
    %163 = arith.addf %152, %162 : vector<24x128xf32>
    %c8_84 = arith.constant 8 : index
    %c0_85 = arith.constant 0 : index
    %c0_86 = arith.constant 0 : index
    %164 = vector.load %arg7[%c8_84, %c0_85, %c0_86] : memref<24x24x128xf32, #tpu.memory_space<vmem>>, vector<1x24x128xf32>
    %165 = vector.shape_cast %164 : vector<1x24x128xf32> to vector<24x128xf32>
    %166 = vector.broadcast %158 : vector<1x128xf32> to vector<24x128xf32>
    %167 = arith.mulf %165, %166 : vector<24x128xf32>
    %168 = arith.addf %157, %167 : vector<24x128xf32>
    %169 = vector.extract_strided_slice %58 {offsets = [9, 0], sizes = [1, 128], strides = [1, 1]} : vector<24x128xf32> to vector<1x128xf32>
    %c9 = arith.constant 9 : index
    %c0_87 = arith.constant 0 : index
    %c0_88 = arith.constant 0 : index
    %170 = vector.load %arg6[%c9, %c0_87, %c0_88] : memref<24x24x128xf32, #tpu.memory_space<vmem>>, vector<1x24x128xf32>
    %171 = vector.shape_cast %170 : vector<1x24x128xf32> to vector<24x128xf32>
    %172 = vector.broadcast %169 : vector<1x128xf32> to vector<24x128xf32>
    %173 = arith.mulf %171, %172 : vector<24x128xf32>
    %174 = arith.addf %163, %173 : vector<24x128xf32>
    %c9_89 = arith.constant 9 : index
    %c0_90 = arith.constant 0 : index
    %c0_91 = arith.constant 0 : index
    %175 = vector.load %arg7[%c9_89, %c0_90, %c0_91] : memref<24x24x128xf32, #tpu.memory_space<vmem>>, vector<1x24x128xf32>
    %176 = vector.shape_cast %175 : vector<1x24x128xf32> to vector<24x128xf32>
    %177 = vector.broadcast %169 : vector<1x128xf32> to vector<24x128xf32>
    %178 = arith.mulf %176, %177 : vector<24x128xf32>
    %179 = arith.addf %168, %178 : vector<24x128xf32>
    %180 = vector.extract_strided_slice %58 {offsets = [10, 0], sizes = [1, 128], strides = [1, 1]} : vector<24x128xf32> to vector<1x128xf32>
    %c10 = arith.constant 10 : index
    %c0_92 = arith.constant 0 : index
    %c0_93 = arith.constant 0 : index
    %181 = vector.load %arg6[%c10, %c0_92, %c0_93] : memref<24x24x128xf32, #tpu.memory_space<vmem>>, vector<1x24x128xf32>
    %182 = vector.shape_cast %181 : vector<1x24x128xf32> to vector<24x128xf32>
    %183 = vector.broadcast %180 : vector<1x128xf32> to vector<24x128xf32>
    %184 = arith.mulf %182, %183 : vector<24x128xf32>
    %185 = arith.addf %174, %184 : vector<24x128xf32>
    %c10_94 = arith.constant 10 : index
    %c0_95 = arith.constant 0 : index
    %c0_96 = arith.constant 0 : index
    %186 = vector.load %arg7[%c10_94, %c0_95, %c0_96] : memref<24x24x128xf32, #tpu.memory_space<vmem>>, vector<1x24x128xf32>
    %187 = vector.shape_cast %186 : vector<1x24x128xf32> to vector<24x128xf32>
    %188 = vector.broadcast %180 : vector<1x128xf32> to vector<24x128xf32>
    %189 = arith.mulf %187, %188 : vector<24x128xf32>
    %190 = arith.addf %179, %189 : vector<24x128xf32>
    %191 = vector.extract_strided_slice %58 {offsets = [11, 0], sizes = [1, 128], strides = [1, 1]} : vector<24x128xf32> to vector<1x128xf32>
    %c11 = arith.constant 11 : index
    %c0_97 = arith.constant 0 : index
    %c0_98 = arith.constant 0 : index
    %192 = vector.load %arg6[%c11, %c0_97, %c0_98] : memref<24x24x128xf32, #tpu.memory_space<vmem>>, vector<1x24x128xf32>
    %193 = vector.shape_cast %192 : vector<1x24x128xf32> to vector<24x128xf32>
    %194 = vector.broadcast %191 : vector<1x128xf32> to vector<24x128xf32>
    %195 = arith.mulf %193, %194 : vector<24x128xf32>
    %196 = arith.addf %185, %195 : vector<24x128xf32>
    %c11_99 = arith.constant 11 : index
    %c0_100 = arith.constant 0 : index
    %c0_101 = arith.constant 0 : index
    %197 = vector.load %arg7[%c11_99, %c0_100, %c0_101] : memref<24x24x128xf32, #tpu.memory_space<vmem>>, vector<1x24x128xf32>
    %198 = vector.shape_cast %197 : vector<1x24x128xf32> to vector<24x128xf32>
    %199 = vector.broadcast %191 : vector<1x128xf32> to vector<24x128xf32>
    %200 = arith.mulf %198, %199 : vector<24x128xf32>
    %201 = arith.addf %190, %200 : vector<24x128xf32>
    %202 = vector.extract_strided_slice %58 {offsets = [12, 0], sizes = [1, 128], strides = [1, 1]} : vector<24x128xf32> to vector<1x128xf32>
    %c12 = arith.constant 12 : index
    %c0_102 = arith.constant 0 : index
    %c0_103 = arith.constant 0 : index
    %203 = vector.load %arg6[%c12, %c0_102, %c0_103] : memref<24x24x128xf32, #tpu.memory_space<vmem>>, vector<1x24x128xf32>
    %204 = vector.shape_cast %203 : vector<1x24x128xf32> to vector<24x128xf32>
    %205 = vector.broadcast %202 : vector<1x128xf32> to vector<24x128xf32>
    %206 = arith.mulf %204, %205 : vector<24x128xf32>
    %207 = arith.addf %196, %206 : vector<24x128xf32>
    %c12_104 = arith.constant 12 : index
    %c0_105 = arith.constant 0 : index
    %c0_106 = arith.constant 0 : index
    %208 = vector.load %arg7[%c12_104, %c0_105, %c0_106] : memref<24x24x128xf32, #tpu.memory_space<vmem>>, vector<1x24x128xf32>
    %209 = vector.shape_cast %208 : vector<1x24x128xf32> to vector<24x128xf32>
    %210 = vector.broadcast %202 : vector<1x128xf32> to vector<24x128xf32>
    %211 = arith.mulf %209, %210 : vector<24x128xf32>
    %212 = arith.addf %201, %211 : vector<24x128xf32>
    %213 = vector.extract_strided_slice %58 {offsets = [13, 0], sizes = [1, 128], strides = [1, 1]} : vector<24x128xf32> to vector<1x128xf32>
    %c13 = arith.constant 13 : index
    %c0_107 = arith.constant 0 : index
    %c0_108 = arith.constant 0 : index
    %214 = vector.load %arg6[%c13, %c0_107, %c0_108] : memref<24x24x128xf32, #tpu.memory_space<vmem>>, vector<1x24x128xf32>
    %215 = vector.shape_cast %214 : vector<1x24x128xf32> to vector<24x128xf32>
    %216 = vector.broadcast %213 : vector<1x128xf32> to vector<24x128xf32>
    %217 = arith.mulf %215, %216 : vector<24x128xf32>
    %218 = arith.addf %207, %217 : vector<24x128xf32>
    %c13_109 = arith.constant 13 : index
    %c0_110 = arith.constant 0 : index
    %c0_111 = arith.constant 0 : index
    %219 = vector.load %arg7[%c13_109, %c0_110, %c0_111] : memref<24x24x128xf32, #tpu.memory_space<vmem>>, vector<1x24x128xf32>
    %220 = vector.shape_cast %219 : vector<1x24x128xf32> to vector<24x128xf32>
    %221 = vector.broadcast %213 : vector<1x128xf32> to vector<24x128xf32>
    %222 = arith.mulf %220, %221 : vector<24x128xf32>
    %223 = arith.addf %212, %222 : vector<24x128xf32>
    %224 = vector.extract_strided_slice %58 {offsets = [14, 0], sizes = [1, 128], strides = [1, 1]} : vector<24x128xf32> to vector<1x128xf32>
    %c14 = arith.constant 14 : index
    %c0_112 = arith.constant 0 : index
    %c0_113 = arith.constant 0 : index
    %225 = vector.load %arg6[%c14, %c0_112, %c0_113] : memref<24x24x128xf32, #tpu.memory_space<vmem>>, vector<1x24x128xf32>
    %226 = vector.shape_cast %225 : vector<1x24x128xf32> to vector<24x128xf32>
    %227 = vector.broadcast %224 : vector<1x128xf32> to vector<24x128xf32>
    %228 = arith.mulf %226, %227 : vector<24x128xf32>
    %229 = arith.addf %218, %228 : vector<24x128xf32>
    %c14_114 = arith.constant 14 : index
    %c0_115 = arith.constant 0 : index
    %c0_116 = arith.constant 0 : index
    %230 = vector.load %arg7[%c14_114, %c0_115, %c0_116] : memref<24x24x128xf32, #tpu.memory_space<vmem>>, vector<1x24x128xf32>
    %231 = vector.shape_cast %230 : vector<1x24x128xf32> to vector<24x128xf32>
    %232 = vector.broadcast %224 : vector<1x128xf32> to vector<24x128xf32>
    %233 = arith.mulf %231, %232 : vector<24x128xf32>
    %234 = arith.addf %223, %233 : vector<24x128xf32>
    %235 = vector.extract_strided_slice %58 {offsets = [15, 0], sizes = [1, 128], strides = [1, 1]} : vector<24x128xf32> to vector<1x128xf32>
    %c15 = arith.constant 15 : index
    %c0_117 = arith.constant 0 : index
    %c0_118 = arith.constant 0 : index
    %236 = vector.load %arg6[%c15, %c0_117, %c0_118] : memref<24x24x128xf32, #tpu.memory_space<vmem>>, vector<1x24x128xf32>
    %237 = vector.shape_cast %236 : vector<1x24x128xf32> to vector<24x128xf32>
    %238 = vector.broadcast %235 : vector<1x128xf32> to vector<24x128xf32>
    %239 = arith.mulf %237, %238 : vector<24x128xf32>
    %240 = arith.addf %229, %239 : vector<24x128xf32>
    %c15_119 = arith.constant 15 : index
    %c0_120 = arith.constant 0 : index
    %c0_121 = arith.constant 0 : index
    %241 = vector.load %arg7[%c15_119, %c0_120, %c0_121] : memref<24x24x128xf32, #tpu.memory_space<vmem>>, vector<1x24x128xf32>
    %242 = vector.shape_cast %241 : vector<1x24x128xf32> to vector<24x128xf32>
    %243 = vector.broadcast %235 : vector<1x128xf32> to vector<24x128xf32>
    %244 = arith.mulf %242, %243 : vector<24x128xf32>
    %245 = arith.addf %234, %244 : vector<24x128xf32>
    %246 = vector.extract_strided_slice %58 {offsets = [16, 0], sizes = [1, 128], strides = [1, 1]} : vector<24x128xf32> to vector<1x128xf32>
    %c16 = arith.constant 16 : index
    %c0_122 = arith.constant 0 : index
    %c0_123 = arith.constant 0 : index
    %247 = vector.load %arg6[%c16, %c0_122, %c0_123] : memref<24x24x128xf32, #tpu.memory_space<vmem>>, vector<1x24x128xf32>
    %248 = vector.shape_cast %247 : vector<1x24x128xf32> to vector<24x128xf32>
    %249 = vector.broadcast %246 : vector<1x128xf32> to vector<24x128xf32>
    %250 = arith.mulf %248, %249 : vector<24x128xf32>
    %251 = arith.addf %240, %250 : vector<24x128xf32>
    %c16_124 = arith.constant 16 : index
    %c0_125 = arith.constant 0 : index
    %c0_126 = arith.constant 0 : index
    %252 = vector.load %arg7[%c16_124, %c0_125, %c0_126] : memref<24x24x128xf32, #tpu.memory_space<vmem>>, vector<1x24x128xf32>
    %253 = vector.shape_cast %252 : vector<1x24x128xf32> to vector<24x128xf32>
    %254 = vector.broadcast %246 : vector<1x128xf32> to vector<24x128xf32>
    %255 = arith.mulf %253, %254 : vector<24x128xf32>
    %256 = arith.addf %245, %255 : vector<24x128xf32>
    %257 = vector.extract_strided_slice %58 {offsets = [17, 0], sizes = [1, 128], strides = [1, 1]} : vector<24x128xf32> to vector<1x128xf32>
    %c17 = arith.constant 17 : index
    %c0_127 = arith.constant 0 : index
    %c0_128 = arith.constant 0 : index
    %258 = vector.load %arg6[%c17, %c0_127, %c0_128] : memref<24x24x128xf32, #tpu.memory_space<vmem>>, vector<1x24x128xf32>
    %259 = vector.shape_cast %258 : vector<1x24x128xf32> to vector<24x128xf32>
    %260 = vector.broadcast %257 : vector<1x128xf32> to vector<24x128xf32>
    %261 = arith.mulf %259, %260 : vector<24x128xf32>
    %262 = arith.addf %251, %261 : vector<24x128xf32>
    %c17_129 = arith.constant 17 : index
    %c0_130 = arith.constant 0 : index
    %c0_131 = arith.constant 0 : index
    %263 = vector.load %arg7[%c17_129, %c0_130, %c0_131] : memref<24x24x128xf32, #tpu.memory_space<vmem>>, vector<1x24x128xf32>
    %264 = vector.shape_cast %263 : vector<1x24x128xf32> to vector<24x128xf32>
    %265 = vector.broadcast %257 : vector<1x128xf32> to vector<24x128xf32>
    %266 = arith.mulf %264, %265 : vector<24x128xf32>
    %267 = arith.addf %256, %266 : vector<24x128xf32>
    %268 = vector.extract_strided_slice %58 {offsets = [18, 0], sizes = [1, 128], strides = [1, 1]} : vector<24x128xf32> to vector<1x128xf32>
    %c18 = arith.constant 18 : index
    %c0_132 = arith.constant 0 : index
    %c0_133 = arith.constant 0 : index
    %269 = vector.load %arg6[%c18, %c0_132, %c0_133] : memref<24x24x128xf32, #tpu.memory_space<vmem>>, vector<1x24x128xf32>
    %270 = vector.shape_cast %269 : vector<1x24x128xf32> to vector<24x128xf32>
    %271 = vector.broadcast %268 : vector<1x128xf32> to vector<24x128xf32>
    %272 = arith.mulf %270, %271 : vector<24x128xf32>
    %273 = arith.addf %262, %272 : vector<24x128xf32>
    %c18_134 = arith.constant 18 : index
    %c0_135 = arith.constant 0 : index
    %c0_136 = arith.constant 0 : index
    %274 = vector.load %arg7[%c18_134, %c0_135, %c0_136] : memref<24x24x128xf32, #tpu.memory_space<vmem>>, vector<1x24x128xf32>
    %275 = vector.shape_cast %274 : vector<1x24x128xf32> to vector<24x128xf32>
    %276 = vector.broadcast %268 : vector<1x128xf32> to vector<24x128xf32>
    %277 = arith.mulf %275, %276 : vector<24x128xf32>
    %278 = arith.addf %267, %277 : vector<24x128xf32>
    %279 = vector.extract_strided_slice %58 {offsets = [19, 0], sizes = [1, 128], strides = [1, 1]} : vector<24x128xf32> to vector<1x128xf32>
    %c19 = arith.constant 19 : index
    %c0_137 = arith.constant 0 : index
    %c0_138 = arith.constant 0 : index
    %280 = vector.load %arg6[%c19, %c0_137, %c0_138] : memref<24x24x128xf32, #tpu.memory_space<vmem>>, vector<1x24x128xf32>
    %281 = vector.shape_cast %280 : vector<1x24x128xf32> to vector<24x128xf32>
    %282 = vector.broadcast %279 : vector<1x128xf32> to vector<24x128xf32>
    %283 = arith.mulf %281, %282 : vector<24x128xf32>
    %284 = arith.addf %273, %283 : vector<24x128xf32>
    %c19_139 = arith.constant 19 : index
    %c0_140 = arith.constant 0 : index
    %c0_141 = arith.constant 0 : index
    %285 = vector.load %arg7[%c19_139, %c0_140, %c0_141] : memref<24x24x128xf32, #tpu.memory_space<vmem>>, vector<1x24x128xf32>
    %286 = vector.shape_cast %285 : vector<1x24x128xf32> to vector<24x128xf32>
    %287 = vector.broadcast %279 : vector<1x128xf32> to vector<24x128xf32>
    %288 = arith.mulf %286, %287 : vector<24x128xf32>
    %289 = arith.addf %278, %288 : vector<24x128xf32>
    %290 = vector.extract_strided_slice %58 {offsets = [20, 0], sizes = [1, 128], strides = [1, 1]} : vector<24x128xf32> to vector<1x128xf32>
    %c20 = arith.constant 20 : index
    %c0_142 = arith.constant 0 : index
    %c0_143 = arith.constant 0 : index
    %291 = vector.load %arg6[%c20, %c0_142, %c0_143] : memref<24x24x128xf32, #tpu.memory_space<vmem>>, vector<1x24x128xf32>
    %292 = vector.shape_cast %291 : vector<1x24x128xf32> to vector<24x128xf32>
    %293 = vector.broadcast %290 : vector<1x128xf32> to vector<24x128xf32>
    %294 = arith.mulf %292, %293 : vector<24x128xf32>
    %295 = arith.addf %284, %294 : vector<24x128xf32>
    %c20_144 = arith.constant 20 : index
    %c0_145 = arith.constant 0 : index
    %c0_146 = arith.constant 0 : index
    %296 = vector.load %arg7[%c20_144, %c0_145, %c0_146] : memref<24x24x128xf32, #tpu.memory_space<vmem>>, vector<1x24x128xf32>
    %297 = vector.shape_cast %296 : vector<1x24x128xf32> to vector<24x128xf32>
    %298 = vector.broadcast %290 : vector<1x128xf32> to vector<24x128xf32>
    %299 = arith.mulf %297, %298 : vector<24x128xf32>
    %300 = arith.addf %289, %299 : vector<24x128xf32>
    %301 = vector.extract_strided_slice %58 {offsets = [21, 0], sizes = [1, 128], strides = [1, 1]} : vector<24x128xf32> to vector<1x128xf32>
    %c21 = arith.constant 21 : index
    %c0_147 = arith.constant 0 : index
    %c0_148 = arith.constant 0 : index
    %302 = vector.load %arg6[%c21, %c0_147, %c0_148] : memref<24x24x128xf32, #tpu.memory_space<vmem>>, vector<1x24x128xf32>
    %303 = vector.shape_cast %302 : vector<1x24x128xf32> to vector<24x128xf32>
    %304 = vector.broadcast %301 : vector<1x128xf32> to vector<24x128xf32>
    %305 = arith.mulf %303, %304 : vector<24x128xf32>
    %306 = arith.addf %295, %305 : vector<24x128xf32>
    %c21_149 = arith.constant 21 : index
    %c0_150 = arith.constant 0 : index
    %c0_151 = arith.constant 0 : index
    %307 = vector.load %arg7[%c21_149, %c0_150, %c0_151] : memref<24x24x128xf32, #tpu.memory_space<vmem>>, vector<1x24x128xf32>
    %308 = vector.shape_cast %307 : vector<1x24x128xf32> to vector<24x128xf32>
    %309 = vector.broadcast %301 : vector<1x128xf32> to vector<24x128xf32>
    %310 = arith.mulf %308, %309 : vector<24x128xf32>
    %311 = arith.addf %300, %310 : vector<24x128xf32>
    %312 = vector.extract_strided_slice %58 {offsets = [22, 0], sizes = [1, 128], strides = [1, 1]} : vector<24x128xf32> to vector<1x128xf32>
    %c22 = arith.constant 22 : index
    %c0_152 = arith.constant 0 : index
    %c0_153 = arith.constant 0 : index
    %313 = vector.load %arg6[%c22, %c0_152, %c0_153] : memref<24x24x128xf32, #tpu.memory_space<vmem>>, vector<1x24x128xf32>
    %314 = vector.shape_cast %313 : vector<1x24x128xf32> to vector<24x128xf32>
    %315 = vector.broadcast %312 : vector<1x128xf32> to vector<24x128xf32>
    %316 = arith.mulf %314, %315 : vector<24x128xf32>
    %317 = arith.addf %306, %316 : vector<24x128xf32>
    %c22_154 = arith.constant 22 : index
    %c0_155 = arith.constant 0 : index
    %c0_156 = arith.constant 0 : index
    %318 = vector.load %arg7[%c22_154, %c0_155, %c0_156] : memref<24x24x128xf32, #tpu.memory_space<vmem>>, vector<1x24x128xf32>
    %319 = vector.shape_cast %318 : vector<1x24x128xf32> to vector<24x128xf32>
    %320 = vector.broadcast %312 : vector<1x128xf32> to vector<24x128xf32>
    %321 = arith.mulf %319, %320 : vector<24x128xf32>
    %322 = arith.addf %311, %321 : vector<24x128xf32>
    %323 = vector.extract_strided_slice %58 {offsets = [23, 0], sizes = [1, 128], strides = [1, 1]} : vector<24x128xf32> to vector<1x128xf32>
    %c23 = arith.constant 23 : index
    %c0_157 = arith.constant 0 : index
    %c0_158 = arith.constant 0 : index
    %324 = vector.load %arg6[%c23, %c0_157, %c0_158] : memref<24x24x128xf32, #tpu.memory_space<vmem>>, vector<1x24x128xf32>
    %325 = vector.shape_cast %324 : vector<1x24x128xf32> to vector<24x128xf32>
    %326 = vector.broadcast %323 : vector<1x128xf32> to vector<24x128xf32>
    %327 = arith.mulf %325, %326 : vector<24x128xf32>
    %328 = arith.addf %317, %327 : vector<24x128xf32>
    %c23_159 = arith.constant 23 : index
    %c0_160 = arith.constant 0 : index
    %c0_161 = arith.constant 0 : index
    %329 = vector.load %arg7[%c23_159, %c0_160, %c0_161] : memref<24x24x128xf32, #tpu.memory_space<vmem>>, vector<1x24x128xf32>
    %330 = vector.shape_cast %329 : vector<1x24x128xf32> to vector<24x128xf32>
    %331 = vector.broadcast %323 : vector<1x128xf32> to vector<24x128xf32>
    %332 = arith.mulf %330, %331 : vector<24x128xf32>
    %333 = arith.addf %322, %332 : vector<24x128xf32>
    %cst_162 = arith.constant 1.11111116 : f32
    %334 = vector.broadcast %cst_162 : f32 to vector<24x128xf32>
    %335 = arith.mulf %328, %334 : vector<24x128xf32>
    %336 = arith.addf %68, %335 : vector<24x128xf32>
    %c0_163 = arith.constant 0 : index
    %c0_164 = arith.constant 0 : index
    %337 = vector.load %arg8[%c0_163, %c0_164] : memref<120x128xf32, #tpu.memory_space<vmem>>, vector<24x128xf32>
    tpu.vector_store %arg8[%c0_163, %c0_164], %336 {strides = array<i32>} : memref<120x128xf32, #tpu.memory_space<vmem>>, vector<24x128xf32>,
    %c48 = arith.constant 48 : index
    %c0_165 = arith.constant 0 : index
    %338 = vector.load %arg8[%c48, %c0_165] : memref<120x128xf32, #tpu.memory_space<vmem>>, vector<24x128xf32>
    tpu.vector_store %arg8[%c48, %c0_165], %333 {strides = array<i32>} : memref<120x128xf32, #tpu.memory_space<vmem>>, vector<24x128xf32>,
    %c72 = arith.constant 72 : index
    %c0_166 = arith.constant 0 : index
    %339 = vector.load %arg8[%c72, %c0_166] : memref<120x128xf32, #tpu.memory_space<vmem>>, vector<24x128xf32>
    tpu.vector_store %arg8[%c72, %c0_166], %335 {strides = array<i32>} : memref<120x128xf32, #tpu.memory_space<vmem>>, vector<24x128xf32>,
    return
  }
  func.func @transform_0(%arg0: i32) -> (i32, i32) {
    %c0_i32 = arith.constant 0 : i32
    %c0_i32_0 = arith.constant 0 : i32
    return %c0_i32, %arg0 : i32, i32
  }
  func.func @transform_1(%arg0: i32) -> (i32, i32, i32) {
    %c0_i32 = arith.constant 0 : i32
    %c0_i32_0 = arith.constant 0 : i32
    %c0_i32_1 = arith.constant 0 : i32
    return %c0_i32, %c0_i32_0, %arg0 : i32, i32, i32
  }
  func.func @transform_2(%arg0: i32) -> (i32, i32, i32) {
    %c0_i32 = arith.constant 0 : i32
    %c0_i32_0 = arith.constant 0 : i32
    %c0_i32_1 = arith.constant 0 : i32
    return %c0_i32, %c0_i32_0, %arg0 : i32, i32, i32
  }
  func.func @transform_3(%arg0: i32) -> (i32, i32, i32) {
    %c0_i32 = arith.constant 0 : i32
    %c0_i32_0 = arith.constant 0 : i32
    %c0_i32_1 = arith.constant 0 : i32
    return %c0_i32, %c0_i32_0, %arg0 : i32, i32, i32
  }
  func.func @transform_4(%arg0: i32) -> (i32, i32, i32) {
    %c0_i32 = arith.constant 0 : i32
    %c0_i32_0 = arith.constant 0 : i32
    %c0_i32_1 = arith.constant 0 : i32
    return %c0_i32, %c0_i32_0, %arg0 : i32, i32, i32
  }
  func.func @transform_5(%arg0: i32) -> (i32, i32, i32) {
    %c0_i32 = arith.constant 0 : i32
    %c0_i32_0 = arith.constant 0 : i32
    %c0_i32_1 = arith.constant 0 : i32
    return %c0_i32, %c0_i32_0, %arg0 : i32, i32, i32
  }
  func.func @transform_6(%arg0: i32) -> (i32, i32, i32) {
    %c0_i32 = arith.constant 0 : i32
    %c0_i32_0 = arith.constant 0 : i32
    %c0_i32_1 = arith.constant 0 : i32
    return %c0_i32, %c0_i32_0, %arg0 : i32, i32, i32
  }
  func.func @transform_7(%arg0: i32) -> (i32, i32) {
    %c0_i32 = arith.constant 0 : i32
    %c0_i32_0 = arith.constant 0 : i32
    return %c0_i32, %arg0 : i32, i32
  }
}

</mosaic_0001>

<bundles_post_ra>
// kernel: tpu_custom_call.1
= control target key start
LH: loop header
LB: loop body
LE: loop exit
PB: predicated region body
PF: predicated region fallthrough
CT: control target
= control target key end

     0   :  { %12 = vsyncpa [#allocation3], 0  ;;  %s1763_s0 = inlined_call_operand.hbm [shape: f32[24,128], index: 0, kind: input, shape index: {}]   ;;  %s1764_s1 = inlined_call_operand.hbm [shape: f32[3,24,128], index: 1, kind: input, shape index: {}]   ;;  %s1765_s2 = inlined_call_operand.hbm [shape: f32[3,24,128], index: 2, kind: input, shape index: {}]   ;;  %s1766_s3 = inlined_call_operand.hbm [shape: f32[3,24,128], index: 3, kind: input, shape index: {}]   ;;  %s1767_s4 = inlined_call_operand.hbm [shape: f32[3,24,128], index: 4, kind: input, shape index: {}]   ;;  %s1768_s5 = inlined_call_operand.hbm [shape: f32[24,24,128], index: 5, kind: input, shape index: {}]   ;;  %s1769_s6 = inlined_call_operand.hbm [shape: f32[24,24,128], index: 6, kind: input, shape index: {}]   ;;  %s1770_s7 = inlined_call_operand.hbm [shape: f32[120,128], index: 7, kind: output, shape index: {}]  }
   0x1   :  { %13 = vsyncpa [#allocation6], 0 }
   0x2   :  { %14 = vsyncpa [#allocation9], 0 }
   0x3   :  { %15 = vsyncpa [#allocation12], 0 }
   0x4   :  { %16 = vsyncpa [#allocation4], 0  ;;  %s1097_s24 = smov [#allocation5]   ;;  %s1098_s26 = smov [#allocation8]  }
   0x5   :  { %s34_s25 = sshll.u32 %s1097_s24, 4  ;;  %s58_s27 = sshll.u32 %s1098_s26, 4  ;;  %s35_s25 = int_to_ptr.vmem [resolvable:$true] %s34_s25  ;;  %s1147_s27 = int_to_ptr.vmem [resolvable:$true] %s58_s27 }
   0x6   :  { %s911_s30 = scalar_lea.hbm %s1764_s1, 1152 }
   0x7   :  { %p912_p0 = scmp.ne.s32.totalorder %s1764_s1, %s911_s30  ;;  %p915_p1 = scmp.lt.u32.totalorder %s911_s30, %s1764_s1 }
   0x9   :  { %p917_p2 = pnand %p915_p1, %p912_p0 }
   0xb   :  { %920 = shalt.err (!%p917_p2)
}
   0xc   :  { %s921_s12 = scalar_lea.vmem %s35_s25, 1152  ;;  %p926_p4 = scmp.lt.s32.totalorder %s35_s25, %s35_s25 }
   0xd   :  { %p922_p3 = scmp.ne.s32.totalorder %s35_s25, %s921_s12  ;;  %p927_p5 = scmp.lt.s32.totalorder %s921_s12, %s921_s12 }
   0xf   :  { %p928_p6 = por %p927_p5, %p926_p4 }
  0x11   :  { %p929_p7 = pnand %p928_p6, %p922_p3 }
  0x13   :  { %932 = shalt.err (!%p929_p7)
}
  0x14   :  { %s1099_s13 = smov 128   ;;  %s1100_s14 = smov 8  }
  0x15   :  { %40 = dma.hbm_to_vmem [thread:$0]  %s1764_s1, 1152, %s35_s25, [#allocation6], %s1099_s13, %s1099_s13, %s1100_s14  }
  0x16   :  { %s933_s19 = scalar_lea.hbm %s1766_s3, 1152 }
  0x17   :  { %p934_p8 = scmp.ne.s32.totalorder %s1766_s3, %s933_s19  ;;  %p937_p9 = scmp.lt.u32.totalorder %s933_s19, %s1766_s3 }
  0x19   :  { %p939_p10 = pnand %p937_p9, %p934_p8 }
  0x1b   :  { %942 = shalt.err (!%p939_p10)
}
  0x1c   :  { %s943_s24 = scalar_lea.vmem %s1147_s27, 1152  ;;  %p948_p12 = scmp.lt.s32.totalorder %s1147_s27, %s1147_s27 }
  0x1d   :  { %p944_p11 = scmp.ne.s32.totalorder %s1147_s27, %s943_s24  ;;  %p949_p13 = scmp.lt.s32.totalorder %s943_s24, %s943_s24 }
  0x1f   :  { %p950_p0 = por %p949_p13, %p948_p12 }
  0x21   :  { %p951_p1 = pnand %p950_p0, %p944_p11 }
  0x23   :  { %954 = shalt.err (!%p951_p1)
}
  0x24   :  { %64 = dma.hbm_to_vmem [thread:$0]  %s1766_s3, 1152, %s1147_s27, [#allocation9], %s1099_s13, %s1099_s13, %s1100_s14  }
  0x25   :  { %s1101_s26 = smov [#allocation11]   ;;  %s1102_s29 = smov [#allocation2]  }
  0x26   :  { %s82_s28 = sshll.u32 %s1101_s26, 4  ;;  %s22_s30 = sshll.u32 %s1102_s29, 4  ;;  %s83_s28 = int_to_ptr.vmem [resolvable:$true] %s82_s28  ;;  %s1184_s30 = int_to_ptr.vmem [resolvable:$true] %s22_s30 }
  0x27   :  { %s955_s10 = scalar_lea.hbm %s1768_s5, 9216 }
  0x28   :  { %p956_p2 = scmp.ne.s32.totalorder %s1768_s5, %s955_s10  ;;  %p959_p3 = scmp.lt.u32.totalorder %s955_s10, %s1768_s5 }
  0x2a   :  { %p961_p4 = pnand %p959_p3, %p956_p2 }
  0x2c   :  { %964 = shalt.err (!%p961_p4)
}
  0x2d   :  { %s965_s3 = scalar_lea.vmem %s83_s28, 9216  ;;  %p970_p6 = scmp.lt.s32.totalorder %s83_s28, %s83_s28 }
  0x2e   :  { %p966_p5 = scmp.ne.s32.totalorder %s83_s28, %s965_s3  ;;  %p971_p7 = scmp.lt.s32.totalorder %s965_s3, %s965_s3 }
  0x30   :  { %p972_p8 = por %p971_p7, %p970_p6 }
  0x32   :  { %p973_p9 = pnand %p972_p8, %p966_p5 }
  0x34   :  { %976 = shalt.err (!%p973_p9)
}
  0x35   :  { %88 = dma.hbm_to_vmem [thread:$0]  %s1768_s5, 9216, %s83_s28, [#allocation12], %s1099_s13, %s1099_s13, %s1100_s14  }
  0x36   :  { %s977_s20 = scalar_lea.hbm %s1763_s0, 384 }
  0x37   :  { %p978_p10 = scmp.ne.s32.totalorder %s1763_s0, %s977_s20  ;;  %p981_p11 = scmp.lt.u32.totalorder %s977_s20, %s1763_s0 }
  0x39   :  { %p983_p12 = pnand %p981_p11, %p978_p10 }
  0x3b   :  { %986 = shalt.err (!%p983_p12)
}
  0x3c   :  { %s987_s1 = scalar_lea.vmem %s1184_s30, 384  ;;  %p992_p0 = scmp.lt.s32.totalorder %s1184_s30, %s1184_s30 }
  0x3d   :  { %p988_p13 = scmp.ne.s32.totalorder %s1184_s30, %s987_s1  ;;  %p993_p1 = scmp.lt.s32.totalorder %s987_s1, %s987_s1 }
  0x3f   :  { %p994_p2 = por %p993_p1, %p992_p0 }
  0x41   :  { %p995_p3 = pnand %p994_p2, %p988_p13 }
  0x43   :  { %998 = shalt.err (!%p995_p3)
}
  0x44   :  { %28 = dma.hbm_to_vmem [thread:$0]  %s1763_s0, 384, %s1184_s30, [#allocation3], %s1099_s13, %s1099_s13, %s1100_s14  }
  0x45   :  { %s1103_s26 = smov [#allocation7]   ;;  %s1104_s29 = smov [#allocation10]  }
  0x46   :  { %s46_s28 = sshll.u32 %s1103_s26, 4  ;;  %s70_s8 = sshll.u32 %s1104_s29, 4  ;;  %s47_s28 = int_to_ptr.vmem [resolvable:$true] %s46_s28  ;;  %s1221_s8 = int_to_ptr.vmem [resolvable:$true] %s70_s8 }
  0x47   :  { %s999_s11 = scalar_lea.hbm %s1765_s2, 1152 }
  0x48   :  { %p1000_p4 = scmp.ne.s32.totalorder %s1765_s2, %s999_s11  ;;  %p1003_p5 = scmp.lt.u32.totalorder %s999_s11, %s1765_s2 }
  0x4a   :  { %p1005_p6 = pnand %p1003_p5, %p1000_p4 }
  0x4c   :  { %1008 = shalt.err (!%p1005_p6)
}
  0x4d   :  { %s1009_s0 = scalar_lea.vmem %s47_s28, 1152  ;;  %p1014_p8 = scmp.lt.s32.totalorder %s47_s28, %s47_s28 }
  0x4e   :  { %p1010_p7 = scmp.ne.s32.totalorder %s47_s28, %s1009_s0  ;;  %p1015_p9 = scmp.lt.s32.totalorder %s1009_s0, %s1009_s0 }
  0x50   :  { %p1016_p10 = por %p1015_p9, %p1014_p8 }
  0x52   :  { %p1017_p11 = pnand %p1016_p10, %p1010_p7 }
  0x54   :  { %1020 = shalt.err (!%p1017_p11)
}
  0x55   :  { %52 = dma.hbm_to_vmem [thread:$0]  %s1765_s2, 1152, %s47_s28, [#allocation6], %s1099_s13, %s1099_s13, %s1100_s14  }
  0x56   :  { %s1021_s19 = scalar_lea.hbm %s1767_s4, 1152 }
  0x57   :  { %p1022_p12 = scmp.ne.s32.totalorder %s1767_s4, %s1021_s19  ;;  %p1025_p13 = scmp.lt.u32.totalorder %s1021_s19, %s1767_s4 }
  0x59   :  { %p1027_p0 = pnand %p1025_p13, %p1022_p12 }
  0x5b   :  { %1030 = shalt.err (!%p1027_p0)
}
  0x5c   :  { %s1031_s24 = scalar_lea.vmem %s1221_s8, 1152  ;;  %p1036_p2 = scmp.lt.s32.totalorder %s1221_s8, %s1221_s8 }
  0x5d   :  { %p1032_p1 = scmp.ne.s32.totalorder %s1221_s8, %s1031_s24  ;;  %p1037_p3 = scmp.lt.s32.totalorder %s1031_s24, %s1031_s24 }
  0x5f   :  { %p1038_p4 = por %p1037_p3, %p1036_p2 }
  0x61   :  { %p1039_p5 = pnand %p1038_p4, %p1032_p1 }
  0x63   :  { %1042 = shalt.err (!%p1039_p5)
}
  0x64   :  { %76 = dma.hbm_to_vmem [thread:$0]  %s1767_s4, 1152, %s1221_s8, [#allocation9], %s1099_s13, %s1099_s13, %s1100_s14  }
  0x65   :  { %s1105_s5 = smov [#allocation13]   ;;  %s1043_s29 = scalar_lea.hbm %s1769_s6, 9216 }
  0x66   :  { %s94_s25 = sshll.u32 %s1105_s5, 4  ;;  %p1044_p6 = scmp.ne.s32.totalorder %s1769_s6, %s1043_s29  ;;  %s95_s25 = int_to_ptr.vmem [resolvable:$true] %s94_s25 }
  0x67   :  { %p1047_p7 = scmp.lt.u32.totalorder %s1043_s29, %s1769_s6 }
  0x69   :  { %p1049_p8 = pnand %p1047_p7, %p1044_p6 }
  0x6b   :  { %1052 = shalt.err (!%p1049_p8)
}
  0x6c   :  { %s1053_s15 = scalar_lea.vmem %s95_s25, 9216  ;;  %p1058_p10 = scmp.lt.s32.totalorder %s95_s25, %s95_s25 }
  0x6d   :  { %p1054_p9 = scmp.ne.s32.totalorder %s95_s25, %s1053_s15  ;;  %p1059_p11 = scmp.lt.s32.totalorder %s1053_s15, %s1053_s15 }
  0x6f   :  { %p1060_p12 = por %p1059_p11, %p1058_p10 }
  0x71   :  { %p1061_p13 = pnand %p1060_p12, %p1054_p9 }
  0x73   :  { %1064 = shalt.err (!%p1061_p13)
}
  0x74   :  { %100 = dma.hbm_to_vmem [thread:$0]  %s1769_s6, 9216, %s95_s25, [#allocation12], %s1099_s13, %s1099_s13, %s1100_s14  }
  0x75   :  { %1087 = dma.done.wait [#allocation3], 384  }
  0x76   :  { %1088 = vsyncadd [#allocation3], 4294966912 }
  0x77   :  { %1089 = dma.done.wait [#allocation6], 2304  }
  0x78   :  { %1090 = vsyncadd [#allocation6], 4294964992 }
  0x79   :  { %1091 = dma.done.wait [#allocation9], 2304  }
  0x7a   :  { %1092 = vsyncadd [#allocation9], 4294964992 }
  0x7b   :  { %1093 = dma.done.wait [#allocation12], 18432  }
  0x7c   :  { %1094 = vsyncadd [#allocation12], 4294948864  ;;  %v125_v0 = vld [vmem:[#allocation10] sm:$0xff]  ;;  %v129_v1 = vld [vmem:[#allocation10 + $0x18] sm:$0xff]  ;;  %v301_v25 = vlaneseq  ;;  %s1106_s6 = smov [#allocation14]  }
  0x7d   :  { %v1273_v2 = vld [vmem:[#allocation10 + $0x30] sm:$0xff]  ;;  %v1275_v3 = vld [vmem:[#allocation5] sm:$0xff]  ;;  %v1277_v4 = vld [vmem:[#allocation5 + $0x18] sm:$0xff]  ;;  %s886_s16 = sshll.u32 %s1106_s6, 4  ;;  %s887_s16 = int_to_ptr.vmem [resolvable:$true] %s886_s16 }
  0x7e   :  { %v1279_v5 = vld [vmem:[#allocation5 + $0x30] sm:$0xff]  ;;  %v1281_v6 = vld [vmem:[#allocation7] sm:$0xff]  ;;  %v1283_v7 = vld [vmem:[#allocation7 + $0x18] sm:$0xff]  ;;  %v169_v8 = vmul.f32 %v1275_v3, %v125_v0  ;;  %v172_v9 = vmul.f32 %v1277_v4, %v129_v1  ;;  %v1331_v49 = vshrl.u32 %v301_v25, 7  ;;  %s1065_s3 = scalar_lea.vmem %s887_s16, 1920  ;;  %p1070_p1 = scmp.lt.s32.totalorder %s887_s16, %s887_s16 }
  0x7f   :  { %v178_v10 = vmul.f32 %v1279_v5, %v1273_v2  ;;  %v196_v11 = vmul.f32 %v1281_v6, %v125_v0  ;;  %v199_v12 = vmul.f32 %v1283_v7, %v129_v1  ;;  %v122_v13 = vld [vmem:[#allocation2] sm:$0xff]  ;;  %v1291_v14 = vld [vmem:[#allocation7 + $0x30] sm:$0xff]  ;;  %v126_v16 = vld [vmem:[#allocation10 + $0x8] sm:$0xff]  ;;  %p1066_p0 = scmp.ne.s32.totalorder %s887_s16, %s1065_s3  ;;  %p1071_p2 = scmp.lt.s32.totalorder %s1065_s3, %s1065_s3 }
  0x80   :  { %v175_v15 = vadd.f32 %v172_v9, %v169_v8  ;;  %v130_v17 = vld [vmem:[#allocation10 + $0x20] sm:$0xff]  ;;  %v1293_v18 = vld [vmem:[#allocation10 + $0x38] sm:$0xff]  ;;  %v1295_v19 = vld [vmem:[#allocation5 + $0x8] sm:$0xff]  ;;  %v205_v29 = vmul.f32 %v1291_v14, %v1273_v2 }
  0x81   :  { %v1297_v21 = vld [vmem:[#allocation5 + $0x20] sm:$0xff]  ;;  %v1299_v22 = vld [vmem:[#allocation5 + $0x38] sm:$0xff]  ;;  %v1301_v23 = vld [vmem:[#allocation7 + $0x8] sm:$0xff]  ;;  %v170_v24 = vmul.f32 %v1295_v19, %v126_v16  ;;  %v202_v28 = vadd.f32 %v199_v12, %v196_v11  ;;  %p1072_p3 = por %p1071_p2, %p1070_p1 }
  0x82   :  { %v181_v20 = vadd.f32 %v178_v10, %v175_v15  ;;  %v1304_v26 = vld [vmem:[#allocation8] sm:$0xff]  ;;  %v1306_v27 = vld [vmem:[#allocation8 + $0x18] sm:$0xff]  ;;  %v173_v31 = vmul.f32 %v1297_v21, %v130_v17  ;;  %v179_v32 = vmul.f32 %v1299_v22, %v1293_v18  ;;  %v1315_v35 = vld [vmem:[#allocation7 + $0x38] sm:$0xff]  ;;  %v197_v36 = vmul.f32 %v1301_v23, %v126_v16 }
  0x83   :  { %v1310_v30 = vld [vmem:[#allocation7 + $0x20] sm:$0xff]  ;;  %v123_v34 = vld [vmem:[#allocation2 + $0x8] sm:$0xff]  ;;  %v1319_v38 = vld [vmem:[#allocation8 + $0x8] sm:$0xff]  ;;  %v223_v44 = vmul.f32 %v1304_v26, %v125_v0  ;;  %v226_v45 = vmul.f32 %v1306_v27, %v129_v1  ;;  %v208_v50 = vadd.f32 %v205_v29, %v202_v28  ;;  %v206_v60 = vmul.f32 %v1315_v35, %v1293_v18  ;;  %p1073_p4 = pnand %p1072_p3, %p1066_p0 }
  0x84   :  { %v184_v33 = vsub.f32 %v181_v20, %v122_v13  ;;  %v200_v37 = vmul.f32 %v1310_v30, %v130_v17  ;;  %v176_v39 = vadd.f32 %v173_v31, %v170_v24  ;;  %v127_v40 = vld [vmem:[#allocation10 + $0x10] sm:$0xff]  ;;  %v131_v41 = vld [vmem:[#allocation10 + $0x28] sm:$0xff]  ;;  %v1321_v42 = vld [vmem:[#allocation10 + $0x40] sm:$0xff]  ;;  %v224_v9 = vmul.f32 %v1319_v38, %v126_v16 }
  0x85   :  { %v1325_v46 = vld [vmem:[#allocation5 + $0x10] sm:$0xff]  ;;  %v1327_v47 = vld [vmem:[#allocation5 + $0x28] sm:$0xff]  ;;  %v1329_v48 = vld [vmem:[#allocation5 + $0x40] sm:$0xff]  ;;  %v1354_v15 = vsub.s32 0, %v1331_v49  ;;  %v1361_v29 = vsub.s32 1, %v1331_v49  ;;  %v229_v16 = vadd.f32 %v226_v45, %v223_v44  ;;  %v1373_v44 = vsub.s32 2, %v1331_v49 }
  0x86   :  { %v187_v43 = vmax.f32 %v184_v33, 0.0  ;;  %v1333_v51 = vld [vmem:[#allocation8 + $0x20] sm:$0xff]  ;;  %v182_v52 = vadd.f32 %v179_v32, %v176_v39  ;;  %v1335_v53 = vld [vmem:[#allocation7 + $0x10] sm:$0xff]  ;;  %v171_v55 = vmul.f32 %v1325_v46, %v127_v40  ;;  %v174_v56 = vmul.f32 %v1327_v47, %v131_v41  ;;  %v1341_v57 = vld [vmem:[#allocation8 + $0x30] sm:$0xff] }
  0x87   :  { %v1337_v54 = vld [vmem:[#allocation7 + $0x28] sm:$0xff]  ;;  %v203_v59 = vadd.f32 %v200_v37, %v197_v36  ;;  %v180_v61 = vmul.f32 %v1329_v48, %v1321_v42  ;;  %v198_v0 = vmul.f32 %v1335_v53, %v127_v40  ;;  %v227_v10 = vmul.f32 %v1333_v51, %v130_v17  ;;  %v124_v11 = vld [vmem:[#allocation2 + $0x10] sm:$0xff]  ;;  %v1351_v12 = vld [vmem:[#allocation7 + $0x40] sm:$0xff] }
  0x88   :  { %v190_v58 = vsub.f32 %v181_v20, %v187_v43  ;;  %v185_v62 = vsub.f32 %v182_v52, %v123_v34  ;;  %v177_v63 = vadd.f32 %v174_v56, %v171_v55  ;;  %v201_v1 = vmul.f32 %v1337_v54, %v131_v41  ;;  %v1358_v24 = vld [vmem:[#allocation8 + $0x38] sm:$0xff]  ;;  %v1364_v33 = vld [vmem:[#allocation8 + $0x10] sm:$0xff]  ;;  %v1370_v56 = vld [vmem:[#allocation8 + $0x28] sm:$0xff] }
  0x89   :  { %v232_v20 = vmul.f32 %v1341_v57, %v1273_v2  ;;  %v209_v31 = vadd.f32 %v206_v60, %v203_v59  ;;  %v207_v2 = vmul.f32 %v1351_v12, %v1321_v42  ;;  %v230_v43 = vadd.f32 %v227_v10, %v224_v9 }
  0x8a   :  { %v193_v8 = vsub.f32 %v122_v13, %v190_v58  ;;  %v188_v25 = vmax.f32 %v185_v62, 0.0  ;;  %v183_v28 = vadd.f32 %v180_v61, %v177_v63  ;;  %v277_v17 = vmul.f32 %v190_v58, %v1279_v5 }
  0x8b   :  { %v204_v37 = vadd.f32 %v201_v1, %v198_v0  ;;  %v233_v55 = vmul.f32 %v1358_v24, %v1293_v18  ;;  %v1379_v59 = vsub.s32 4, %v1331_v49  ;;  %v235_v61 = vadd.f32 %v232_v20, %v229_v16  ;;  %v1383_v0 = vld [vmem:[#allocation8 + $0x40] sm:$0xff] }
  0x8c   :  { %v211_v13 = vsub.f32 %v208_v50, %v193_v8  ;;  %v191_v32 = vsub.f32 %v182_v52, %v188_v25  ;;  %v186_v36 = vsub.f32 %v183_v28, %v124_v11  ;;  %v1376_v52 = vsub.s32 3, %v1331_v49 }
  0x8d   :  { %v225_v62 = vmul.f32 %v1364_v33, %v127_v40  ;;  %v210_v9 = vadd.f32 %v207_v2, %v204_v37  ;;  %v247_v25 = vmul.f32 %v190_v58, %v1275_v3  ;;  %v262_v20 = vmul.f32 %v190_v58, %v1277_v4 }
  0x8e   :  { %v214_v39 = vmax.f32 %v211_v13, 0.0  ;;  %v194_v45 = vsub.f32 %v123_v34, %v191_v32  ;;  %v189_v5 = vmax.f32 %v186_v36, 0.0  ;;  %v278_v63 = vmul.f32 %v191_v32, %v1299_v22 }
  0x8f   :  { %v228_v34 = vmul.f32 %v1370_v56, %v131_v41  ;;  %v236_v13 = vadd.f32 %v233_v55, %v230_v43  ;;  %v1400_v4 = vsub.s32 5, %v1331_v49  ;;  %v1403_v58 = vsub.s32 6, %v1331_v49 }
  0x90   :  { %v217_v60 = vsub.f32 %v208_v50, %v214_v39  ;;  %v212_v18 = vsub.f32 %v209_v31, %v194_v45  ;;  %v192_v1 = vsub.f32 %v183_v28, %v189_v5  ;;  %v234_v28 = vmul.f32 %v1383_v0, %v1321_v42 }
  0x91   :  { %v231_v3 = vadd.f32 %v228_v34, %v225_v62  ;;  %v263_v42 = vmul.f32 %v191_v32, %v1297_v21 }
  0x92   :  { %v220_v10 = vsub.f32 %v193_v8, %v217_v60  ;;  %v280_v36 = vmul.f32 %v217_v60, %v1291_v14  ;;  %v250_v50 = vmul.f32 %v217_v60, %v1281_v6  ;;  %v215_v40 = vmax.f32 %v212_v18, 0.0 }
  0x93   :  { %v195_v16 = vsub.f32 %v124_v11, %v192_v1  ;;  %v265_v39 = vmul.f32 %v217_v60, %v1283_v7  ;;  %v1396_v2 = vmul.f32 %v192_v1, %v1329_v48  ;;  %v248_v6 = vmul.f32 %v191_v32, %v1295_v19 }
  0x94   :  { %v238_v22 = vsub.f32 %v235_v61, %v220_v10  ;;  %v1393_v37 = vadd.f32 %v280_v36, %v277_v17  ;;  %v218_v41 = vsub.f32 %v209_v31, %v215_v40  ;;  %v253_v7 = vadd.f32 %v250_v50, %v247_v25  ;;  %v315_v50 = vld [vmem:[#allocation11 + $0x18] sm:$0xff] }
  0x95   :  { %v213_v8 = vsub.f32 %v210_v9, %v195_v16  ;;  %v268_v43 = vadd.f32 %v265_v39, %v262_v20  ;;  %v237_v62 = vadd.f32 %v234_v28, %v231_v3  ;;  %v249_v21 = vmul.f32 %v192_v1, %v1325_v46  ;;  %v339_v20 = vld [vmem:[#allocation11 + $0x30] sm:$0xff] }
  0x96   :  { %v241_v14 = vmax.f32 %v238_v22, 0.0  ;;  %v221_v11 = vsub.f32 %v194_v45, %v218_v41  ;;  %v251_v48 = vmul.f32 %v218_v41, %v1301_v23  ;;  %v281_v55 = vmul.f32 %v218_v41, %v1315_v35  ;;  %v363_v22 = vld [vmem:[#allocation11 + $0x48] sm:$0xff] }
  0x97   :  { %v216_v17 = vmax.f32 %v213_v8, 0.0  ;;  %v266_v19 = vmul.f32 %v218_v41, %v1310_v30  ;;  %v264_v35 = vmul.f32 %v192_v1, %v1327_v47 }
  0x98   :  { %v1406_v31 = vsub.f32 %v235_v61, %v241_v14  ;;  %v239_v5 = vsub.f32 %v236_v13, %v221_v11  ;;  %v1416_v32 = vadd.f32 %v281_v55, %v278_v63  ;;  %v298_v63 = vld [vmem:[#allocation11] sm:$0xff]  ;;  %v411_v55 = vld [vmem:[#allocation11 + $0x78] sm:$0xff] }
  0x99   :  { %v219_v60 = vsub.f32 %v210_v9, %v216_v17  ;;  %v254_v9 = vadd.f32 %v251_v48, %v248_v6  ;;  %v269_v36 = vadd.f32 %v266_v19, %v263_v42  ;;  %v1455_v17 = vsub.s32 7, %v1331_v49  ;;  %v435_v49 = vld [vmem:[#allocation11 + $0x90] sm:$0xff] }
  0x9a   :  { %v256_v18 = vmul.f32 %v1406_v31, %v1304_v26  ;;  %v271_v45 = vmul.f32 %v1406_v31, %v1306_v27  ;;  %v242_v61 = vmax.f32 %v239_v5, 0.0 }
  0x9b   :  { %v222_v34 = vsub.f32 %v195_v16, %v219_v60  ;;  %v252_v23 = vmul.f32 %v219_v60, %v1335_v53  ;;  %v1421_v25 = vmul.f32 %v219_v60, %v1351_v12  ;;  %v267_v46 = vmul.f32 %v219_v60, %v1337_v54 }
  0x9c   :  { %v259_v10 = vadd.f32 %v256_v18, %v253_v7  ;;  %v274_v30 = vadd.f32 %v271_v45, %v268_v43  ;;  %v1423_v26 = vsub.f32 %v236_v13, %v242_v61  ;;  %v387_v7 = vld [vmem:[#allocation11 + $0x60] sm:$0xff] }
  0x9d   :  { %v240_v27 = vsub.f32 %v237_v62, %v222_v34  ;;  %v255_v16 = vadd.f32 %v252_v23, %v249_v21 }
  0x9e   :  { %292 = vst [vmem:[#allocation14 + $0x18] sm:$0xff] %v274_v30  ;;  %295 = vst [vmem:[#allocation14 + $0x60] sm:$0xff] %v259_v10  ;;  %v1427_v53 = vrot.slane %v259_v10, %v1354_v15  ;;  %v1430_v47 = vrot.slane %v259_v10, %v1361_v29  ;;  %v1433_v12 = vrot.slane %v259_v10, %v1373_v44 }
  0x9f   :  { %v1436_v1 = vrot.slane %v259_v10, %v1376_v52  ;;  %v257_v54 = vmul.f32 %v1423_v26, %v1319_v38  ;;  %v272_v13 = vmul.f32 %v1423_v26, %v1333_v51  ;;  %v243_v40 = vmax.f32 %v240_v27, 0.0 }
  0xa0   :  { %v305_v39 = vmul.f32 %v1427_v53, %v298_v63  ;;  %v322_v28 = vmul.f32 %v1430_v47, %v315_v50  ;;  %v346_v41 = vmul.f32 %v1433_v12, %v339_v20  ;;  %v1446_v8 = vrot.slane %v259_v10, %v1379_v59  ;;  %v299_v63 = vld [vmem:[#allocation11 + $0x8] sm:$0xff] }
  0xa1   :  { %v260_v3 = vadd.f32 %v257_v54, %v254_v9  ;;  %v275_v14 = vadd.f32 %v272_v13, %v269_v36  ;;  %v1448_v6 = vsub.f32 %v237_v62, %v243_v40  ;;  %v270_v38 = vadd.f32 %v267_v46, %v264_v35  ;;  %v483_v9 = vld [vmem:[#allocation11 + $0xc0] sm:$0xff]  ;;  %v507_v36 = vld [vmem:[#allocation11 + $0xd8] sm:$0xff]  ;;  %v531_v13 = vld [vmem:[#allocation11 + $0xf0] sm:$0xff] }
  0xa2   :  { %v325_v11 = vadd.f32 %v322_v28, %v305_v39  ;;  %v370_v51 = vmul.f32 %v1436_v1, %v363_v22  ;;  %v1452_v42 = vrot.slane %v259_v10, %v1400_v4  ;;  %v394_v19 = vmul.f32 %v1446_v8, %v387_v7  ;;  %v340_v40 = vld [vmem:[#allocation11 + $0x38] sm:$0xff] }
  0xa3   :  { %293 = vst [vmem:[#allocation14 + $0x20] sm:$0xff] %v275_v14  ;;  %296 = vst [vmem:[#allocation14 + $0x68] sm:$0xff] %v260_v3  ;;  %v258_v43 = vmul.f32 %v1448_v6, %v1364_v33  ;;  %v273_v48 = vmul.f32 %v1448_v6, %v1370_v56  ;;  %v1463_v60 = vrot.slane %v259_v10, %v1403_v58  ;;  %v459_v56 = vld [vmem:[#allocation11 + $0xa8] sm:$0xff]  ;;  %v603_v7 = vld [vmem:[#allocation11 + $0x138] sm:$0xff] }
  0xa4   :  { %v349_v5 = vadd.f32 %v346_v41, %v325_v11  ;;  %v418_v21 = vmul.f32 %v1452_v42, %v411_v55  ;;  %v1469_v61 = vrot.slane %v259_v10, %v1455_v17  ;;  %v286_v33 = vmul.f32 %v1406_v31, %v1341_v57  ;;  %v316_v57 = vld [vmem:[#allocation11 + $0x20] sm:$0xff]  ;;  %v555_v14 = vld [vmem:[#allocation11 + $0x108] sm:$0xff]  ;;  %v627_v55 = vld [vmem:[#allocation11 + $0x150] sm:$0xff] }
  0xa5   :  { %v1465_v62 = vadd.f32 %v258_v43, %v255_v16  ;;  %v276_v18 = vadd.f32 %v273_v48, %v270_v38  ;;  %v442_v23 = vmul.f32 %v1463_v60, %v435_v49  ;;  %v1476_v35 = vrot.slane %v260_v3, %v1354_v15  ;;  %v579_v38 = vld [vmem:[#allocation11 + $0x120] sm:$0xff]  ;;  %v388_v49 = vld [vmem:[#allocation11 + $0x68] sm:$0xff] }
  0xa6   :  { %v373_v45 = vadd.f32 %v370_v51, %v349_v5  ;;  %v1479_v30 = vrot.slane %v260_v3, %v1361_v29  ;;  %v466_v27 = vmul.f32 %v1469_v61, %v459_v56  ;;  %v1483_v46 = vrot.slane %v260_v3, %v1373_v44 }
  0xa7   :  { %294 = vst [vmem:[#allocation14 + $0x28] sm:$0xff] %v276_v18  ;;  %297 = vst [vmem:[#allocation14 + $0x70] sm:$0xff] %v1465_v62  ;;  %v1486_v31 = vadd.f32 %v286_v33, %v1393_v37  ;;  %v490_v20 = vmul.f32 %v1476_v35, %v483_v9  ;;  %v1491_v16 = vrot.slane %v260_v3, %v1376_v52  ;;  %v364_v37 = vld [vmem:[#allocation11 + $0x50] sm:$0xff]  ;;  %v412_v9 = vld [vmem:[#allocation11 + $0x80] sm:$0xff] }
  0xa8   :  { %v397_v34 = vadd.f32 %v394_v19, %v373_v45  ;;  %v514_v54 = vmul.f32 %v1479_v30, %v507_v36  ;;  %v1494_v22 = vrot.slane %v260_v3, %v1379_v59  ;;  %v1497_v39 = vrot.slane %v260_v3, %v1400_v4 }
  0xa9   :  { %1775 = vst [vmem:[#allocation20_spill] sm:$0xff] %v1486_v31  ;;  %v1500_v28 = vrot.slane %v260_v3, %v1403_v58  ;;  %v287_v11 = vmul.f32 %v1423_v26, %v1358_v24  ;;  %v306_v51 = vmul.f32 %v1427_v53, %v299_v63  ;;  %v323_v43 = vmul.f32 %v1430_v47, %v316_v57  ;;  %v675_v24 = vld [vmem:[#allocation11 + $0x180] sm:$0xff] }
  0xaa   :  { %v421_v10 = vadd.f32 %v418_v21, %v397_v34  ;;  %v538_v48 = vmul.f32 %v1483_v46, %v531_v13  ;;  %v1508_v5 = vrot.slane %v260_v3, %v1455_v17  ;;  %v1512_v19 = vrot.slane %v1465_v62, %v1354_v15  ;;  %v651_v21 = vld [vmem:[#allocation11 + $0x168] sm:$0xff] }
  0xab   :  { %v347_v18 = vmul.f32 %v1433_v12, %v340_v40  ;;  %v1516_v26 = vadd.f32 %v287_v11, %v1416_v32  ;;  %v326_v33 = vadd.f32 %v323_v43, %v306_v51  ;;  %v371_v56 = vmul.f32 %v1436_v1, %v364_v37  ;;  %v460_v43 = vld [vmem:[#allocation11 + $0xb0] sm:$0xff] }
  0xac   :  { %v445_v50 = vadd.f32 %v442_v23, %v421_v10  ;;  %1776 = vst [vmem:[#allocation21_spill] sm:$0xff] %v1512_v19  ;;  %v562_v34 = vmul.f32 %v1491_v16, %v555_v14  ;;  %v586_v3 = vmul.f32 %v1494_v22, %v579_v38  ;;  %v610_v23 = vmul.f32 %v1497_v39, %v603_v7  ;;  %v300_v14 = vld [vmem:[#allocation11 + $0x10] sm:$0xff]  ;;  %v317_v38 = vld [vmem:[#allocation11 + $0x28] sm:$0xff]  ;;  %v341_v7 = vld [vmem:[#allocation11 + $0x40] sm:$0xff] }
  0xad   :  { %1777 = vst [vmem:[#allocation22_spill] sm:$0xff] %v1516_v26  ;;  %v1524_v15 = vrot.slane %v1465_v62, %v1361_v29  ;;  %v634_v10 = vmul.f32 %v1500_v28, %v627_v55  ;;  %v350_v32 = vadd.f32 %v347_v18, %v326_v33  ;;  %v395_v63 = vmul.f32 %v1446_v8, %v388_v49  ;;  %v747_v55 = vld [vmem:[#allocation11 + $0x1c8] sm:$0xff] }
  0xae   :  { %v469_v41 = vadd.f32 %v466_v27, %v445_v50  ;;  %v699_v27 = vld [vmem:[#allocation11 + $0x198] sm:$0xff]  ;;  %v1529_v57 = vmul.f32 %v1508_v5, %v651_v21  ;;  %v1532_v50 = vmul.f32 %v1512_v19, %v675_v24  ;;  %v1540_v29 = vrot.slane %v1465_v62, %v1376_v52  ;;  %v484_v24 = vld [vmem:[#allocation11 + $0xc8] sm:$0xff] }
  0xaf   :  { %v1544_v40 = vrot.slane %v1465_v62, %v1379_v59  ;;  %v374_v37 = vadd.f32 %v371_v56, %v350_v32  ;;  %v1548_v11 = vmul.f32 %v1524_v15, %v699_v27  ;;  %v1552_v52 = vrot.slane %v1465_v62, %v1400_v4  ;;  %v365_v21 = vld [vmem:[#allocation11 + $0x58] sm:$0xff]  ;;  %v771_v4 = vld [vmem:[#allocation11 + $0x1e0] sm:$0xff]  ;;  %v772_v26 = vld [vmem:[#allocation11 + $0x1e8] sm:$0xff] }
  0xb0   :  { %v493_v45 = vadd.f32 %v490_v20, %v469_v41  ;;  %v1536_v20 = vrot.slane %v1465_v62, %v1373_v44  ;;  %v419_v41 = vmul.f32 %v1452_v42, %v412_v9  ;;  %v723_v44 = vld [vmem:[#allocation11 + $0x1b0] sm:$0xff]  ;;  %v1556_v51 = vrot.slane %v1465_v62, %v1403_v58  ;;  %v795_v9 = vld [vmem:[#allocation11 + $0x1f8] sm:$0xff] }
  0xb1   :  { %v1560_v59 = vrot.slane %v1465_v62, %v1455_v17  ;;  %v398_v18 = vadd.f32 %v395_v63, %v374_v37  ;;  %v288_v58 = vmul.f32 %v1448_v6, %v1383_v0  ;;  %v307_v33 = vmul.f32 %v1427_v53, %v300_v14  ;;  %v843_v0 = vld [vmem:[#allocation11 + $0x228] sm:$0xff]  ;;  %v508_v6 = vld [vmem:[#allocation11 + $0xe0] sm:$0xff] }
  0xb2   :  { %v517_v36 = vadd.f32 %v514_v54, %v493_v45  ;;  %1778 = vst [vmem:[#allocation23_spill] sm:$0xff] %v1536_v20  ;;  %v436_v54 = vld [vmem:[#allocation11 + $0x98] sm:$0xff]  ;;  %v285_v45 = vadd.f32 %v1421_v25, %v1396_v2  ;;  %v324_v17 = vmul.f32 %v1430_v47, %v317_v38  ;;  %v348_v62 = vmul.f32 %v1433_v12, %v341_v7  ;;  %v389_v25 = vld [vmem:[#allocation11 + $0x70] sm:$0xff] }
  0xb3   :  { %v443_v49 = vmul.f32 %v1463_v60, %v436_v54  ;;  %v422_v27 = vadd.f32 %v419_v41, %v398_v18  ;;  %v467_v2 = vmul.f32 %v1469_v61, %v460_v43  ;;  %v1575_v32 = vmul.f32 %v1540_v29, %v747_v55  ;;  %v532_v38 = vld [vmem:[#allocation11 + $0xf8] sm:$0xff]  ;;  %v556_v7 = vld [vmem:[#allocation11 + $0x110] sm:$0xff]  ;;  %v580_v55 = vld [vmem:[#allocation11 + $0x128] sm:$0xff] }
  0xb4   :  { %v541_v13 = vadd.f32 %v538_v48, %v517_v36  ;;  %v819_v36 = vld [vmem:[#allocation11 + $0x210] sm:$0xff]  ;;  %v1577_v63 = vadd.f32 %v288_v58, %v285_v45  ;;  %v327_v54 = vadd.f32 %v324_v17, %v307_v33  ;;  %v1581_v37 = vmul.f32 %v1544_v40, %v771_v4  ;;  %v604_v18 = vld [vmem:[#allocation11 + $0x140] sm:$0xff]  ;;  %v628_v58 = vld [vmem:[#allocation11 + $0x158] sm:$0xff] }
  0xb5   :  { %v446_v14 = vadd.f32 %v443_v49, %v422_v27  ;;  %v491_v41 = vmul.f32 %v1476_v35, %v484_v24  ;;  %v1585_v43 = vmul.f32 %v1552_v52, %v795_v9  ;;  %v1592_v4 = vmul.f32 %v1560_v59, %v843_v0  ;;  %v652_v33 = vld [vmem:[#allocation11 + $0x170] sm:$0xff]  ;;  %v437_v17 = vld [vmem:[#allocation11 + $0xa0] sm:$0xff] }
  0xb6   :  { %v565_v48 = vadd.f32 %v562_v34, %v541_v13  ;;  %v1571_v34 = vmul.f32 %v1536_v20, %v723_v44  ;;  %1779 = vst [vmem:[#allocation24_spill] sm:$0xff] %v1577_v63  ;;  %v372_v13 = vmul.f32 %v1436_v1, %v365_v21  ;;  %v413_v44 = vld [vmem:[#allocation11 + $0x88] sm:$0xff]  ;;  %v351_v45 = vadd.f32 %v348_v62, %v327_v54  ;;  %v461_v54 = vld [vmem:[#allocation11 + $0xb8] sm:$0xff] }
  0xb7   :  { %1780 = vst [vmem:[#allocation25_spill] sm:$0xff] %v1592_v4  ;;  %v470_v49 = vadd.f32 %v467_v2, %v446_v14  ;;  %v515_v24 = vmul.f32 %v1479_v30, %v508_v6  ;;  %v563_v9 = vmul.f32 %v1491_v16, %v556_v7  ;;  %v420_v62 = vmul.f32 %v1452_v42, %v413_v44  ;;  %v308_v6 = vld [vmem:[#allocation13] sm:$0xff]  ;;  %v353_v14 = vld [vmem:[#allocation13 + $0x30] sm:$0xff]  ;;  %v724_v7 = vld [vmem:[#allocation11 + $0x1b8] sm:$0xff] }
  0xb8   :  { %v589_v56 = vadd.f32 %v586_v3, %v565_v48  ;;  %v1588_v48 = vmul.f32 %v1556_v51, %v819_v36  ;;  %v676_v36 = vld [vmem:[#allocation11 + $0x188] sm:$0xff]  ;;  %v375_v27 = vadd.f32 %v372_v13, %v351_v45  ;;  %v587_v0 = vmul.f32 %v1494_v22, %v580_v55  ;;  %v700_v13 = vld [vmem:[#allocation11 + $0x1a0] sm:$0xff] }
  0xb9   :  { %v611_v2 = vmul.f32 %v1497_v39, %v604_v18  ;;  %v1602_v63 = vmul.f32 %v1500_v28, %v628_v58  ;;  %v444_v45 = vmul.f32 %v1463_v60, %v437_v17  ;;  %v1610_v55 = vmul.f32 %v1512_v19, %v676_v36  ;;  %v748_v58 = vld [vmem:[#allocation11 + $0x1d0] sm:$0xff] }
  0xba   :  { %v613_v3 = vadd.f32 %v610_v23, %v589_v56  ;;  %v396_v23 = vmul.f32 %v1446_v8, %v389_v25  ;;  %v539_v56 = vmul.f32 %v1483_v46, %v532_v38  ;;  %v494_v25 = vadd.f32 %v491_v41, %v470_v49  ;;  %v377_v49 = vld [vmem:[#allocation13 + $0x48] sm:$0xff] }
  0xbb   :  { %v1605_v38 = vmul.f32 %v1508_v5, %v652_v33  ;;  %v468_v18 = vmul.f32 %v1469_v61, %v461_v54  ;;  %v311_v33 = vmul.f32 %v308_v6, %v1427_v53  ;;  %v1621_v36 = vmul.f32 %v1536_v20, %v724_v7  ;;  %v401_v54 = vld [vmem:[#allocation13 + $0x60] sm:$0xff] }
  0xbc   :  { %v637_v21 = vadd.f32 %v634_v10, %v613_v3  ;;  %v329_v3 = vld [vmem:[#allocation13 + $0x18] sm:$0xff]  ;;  %v399_v44 = vadd.f32 %v396_v23, %v375_v27  ;;  %v518_v41 = vadd.f32 %v515_v24, %v494_v25  ;;  %v356_v23 = vmul.f32 %v353_v14, %v1433_v12  ;;  %v509_v27 = vld [vmem:[#allocation11 + $0xe8] sm:$0xff]  ;;  %v533_v7 = vld [vmem:[#allocation11 + $0x100] sm:$0xff] }
  0xbd   :  { %v332_v4 = vmul.f32 %v329_v3, %v1430_v47  ;;  %v1618_v24 = vmul.f32 %v1524_v15, %v700_v13  ;;  %v820_v25 = vld [vmem:[#allocation11 + $0x218] sm:$0xff]  ;;  %v380_v3 = vmul.f32 %v377_v49, %v1436_v1  ;;  %v1630_v13 = vmul.f32 %v1544_v40, %v772_v26  ;;  %v581_v26 = vld [vmem:[#allocation11 + $0x130] sm:$0xff] }
  0xbe   :  { %v661_v10 = vadd.f32 %v1529_v57, %v637_v21  ;;  %v485_v21 = vld [vmem:[#allocation11 + $0xd0] sm:$0xff]  ;;  %v423_v31 = vadd.f32 %v420_v62, %v399_v44 }
  0xbf   :  { %v492_v6 = vmul.f32 %v1476_v35, %v485_v21  ;;  %v335_v44 = vadd.f32 %v332_v4, %v311_v33  ;;  %v404_v4 = vmul.f32 %v401_v54, %v1446_v8  ;;  %v449_v33 = vld [vmem:[#allocation13 + $0x90] sm:$0xff] }
  0xc0   :  { %v685_v57 = vadd.f32 %v1532_v50, %v661_v10  ;;  %v542_v50 = vadd.f32 %v539_v56, %v518_v41  ;;  %v796_v10 = vld [vmem:[#allocation11 + $0x200] sm:$0xff]  ;;  %v447_v62 = vadd.f32 %v444_v45, %v423_v31  ;;  %v1627_v56 = vmul.f32 %v1540_v29, %v748_v58  ;;  %v844_v41 = vld [vmem:[#allocation11 + $0x230] sm:$0xff]  ;;  %v557_v45 = vld [vmem:[#allocation11 + $0x118] sm:$0xff] }
  0xc1   :  { %v516_v31 = vmul.f32 %v1479_v30, %v509_v27  ;;  %v359_v21 = vadd.f32 %v356_v23, %v335_v44  ;;  %v1639_v58 = vmul.f32 %v1556_v51, %v820_v25  ;;  %v629_v27 = vld [vmem:[#allocation11 + $0x160] sm:$0xff]  ;;  %v653_v25 = vld [vmem:[#allocation11 + $0x178] sm:$0xff]  ;;  %v473_v44 = vld [vmem:[#allocation13 + $0xa8] sm:$0xff] }
  0xc2   :  { %v709_v17 = vadd.f32 %v1548_v11, %v685_v57  ;;  %v566_v11 = vadd.f32 %v563_v9, %v542_v50  ;;  %v425_v57 = vld [vmem:[#allocation13 + $0x78] sm:$0xff]  ;;  %v471_v20 = vadd.f32 %v468_v18, %v447_v62  ;;  %v1636_v9 = vmul.f32 %v1552_v52, %v796_v10  ;;  %v605_v50 = vld [vmem:[#allocation11 + $0x148] sm:$0xff] }
  0xc3   :  { %v540_v18 = vmul.f32 %v1483_v46, %v533_v7  ;;  %v383_v62 = vadd.f32 %v380_v3, %v359_v21  ;;  %v428_v23 = vmul.f32 %v425_v57, %v1452_v42  ;;  %v564_v10 = vmul.f32 %v1491_v16, %v557_v45  ;;  %v497_v7 = vld [vmem:[#allocation13 + $0xc0] sm:$0xff]  ;;  %v309_v3 = vld [vmem:[#allocation13 + $0x8] sm:$0xff]  ;;  %v354_v45 = vld [vmem:[#allocation13 + $0x38] sm:$0xff] }
  0xc4   :  { %v733_v14 = vadd.f32 %v1571_v34, %v709_v17  ;;  %v590_v34 = vadd.f32 %v587_v0, %v566_v11  ;;  %v495_v17 = vadd.f32 %v492_v6, %v471_v20  ;;  %v1645_v0 = vmul.f32 %v1560_v59, %v844_v41  ;;  %v330_v21 = vld [vmem:[#allocation13 + $0x20] sm:$0xff] }
  0xc5   :  { %v588_v20 = vmul.f32 %v1494_v22, %v581_v26  ;;  %v407_v6 = vadd.f32 %v404_v4, %v383_v62  ;;  %v452_v11 = vmul.f32 %v449_v33, %v1463_v60  ;;  %v636_v41 = vmul.f32 %v1500_v28, %v629_v27  ;;  %v521_v33 = vld [vmem:[#allocation13 + $0xd8] sm:$0xff]  ;;  %v378_v62 = vld [vmem:[#allocation13 + $0x50] sm:$0xff] }
  0xc6   :  { %v757_v49 = vadd.f32 %v1575_v32, %v733_v14  ;;  %v614_v32 = vadd.f32 %v611_v2, %v590_v34  ;;  %v519_v14 = vadd.f32 %v516_v31, %v495_v17  ;;  %v612_v2 = vmul.f32 %v1497_v39, %v605_v50  ;;  %v677_v34 = vld [vmem:[#allocation11 + $0x190] sm:$0xff] }
  0xc7   :  { %v660_v31 = vmul.f32 %v1508_v5, %v653_v25  ;;  %v431_v26 = vadd.f32 %v428_v23, %v407_v6  ;;  %v476_v4 = vmul.f32 %v473_v44, %v1469_v61  ;;  %v312_v50 = vmul.f32 %v309_v3, %v1427_v53  ;;  %v725_v3 = vld [vmem:[#allocation11 + $0x1c0] sm:$0xff] }
  0xc8   :  { %v781_v54 = vadd.f32 %v1581_v37, %v757_v49  ;;  %v638_v37 = vadd.f32 %v1602_v63, %v614_v32  ;;  %v543_v49 = vadd.f32 %v540_v18, %v519_v14  ;;  %v500_v63 = vmul.f32 %v497_v7, %v1476_v35  ;;  %v545_v18 = vld [vmem:[#allocation13 + $0xf0] sm:$0xff]  ;;  %v1781_v14 = vld [vmem:[#allocation25_spill] sm:$0xff]  ;;  %v402_v7 = vld [vmem:[#allocation13 + $0x68] sm:$0xff] }
  0xc9   :  { %v455_v32 = vadd.f32 %v452_v11, %v431_v26  ;;  %v333_v25 = vmul.f32 %v330_v21, %v1430_v47  ;;  %v357_v23 = vmul.f32 %v354_v45, %v1433_v12  ;;  %v381_v11 = vmul.f32 %v378_v62, %v1436_v1 }
  0xca   :  { %v805_v57 = vadd.f32 %v1585_v43, %v781_v54  ;;  %v662_v43 = vadd.f32 %v1605_v38, %v638_v37  ;;  %v567_v27 = vadd.f32 %v564_v10, %v543_v49  ;;  %v701_v54 = vld [vmem:[#allocation11 + $0x1a8] sm:$0xff]  ;;  %v524_v38 = vmul.f32 %v521_v33, %v1479_v30 }
  0xcb   :  { %v479_v37 = vadd.f32 %v476_v4, %v455_v32  ;;  %v569_v10 = vld [vmem:[#allocation13 + $0x108] sm:$0xff]  ;;  %v336_v49 = vadd.f32 %v333_v25, %v312_v50  ;;  %v708_v45 = vmul.f32 %v1524_v15, %v701_v54  ;;  %v405_v4 = vmul.f32 %v402_v7, %v1446_v8  ;;  %v1783_v32 = vld [vmem:[#allocation23_spill] sm:$0xff]  ;;  %v450_v25 = vld [vmem:[#allocation13 + $0x98] sm:$0xff] }
  0xcc   :  { %v829_v17 = vadd.f32 %v1588_v48, %v805_v57  ;;  %v686_v6 = vadd.f32 %v1610_v55, %v662_v43  ;;  %v684_v48 = vmul.f32 %v1512_v19, %v677_v34  ;;  %v591_v57 = vadd.f32 %v588_v20, %v567_v27  ;;  %v426_v55 = vld [vmem:[#allocation13 + $0x80] sm:$0xff]  ;;  %v749_v34 = vld [vmem:[#allocation11 + $0x1d8] sm:$0xff] }
  0xcd   :  { %v503_v33 = vadd.f32 %v500_v63, %v479_v37  ;;  %v593_v19 = vld [vmem:[#allocation13 + $0x120] sm:$0xff]  ;;  %v360_v20 = vadd.f32 %v357_v23, %v336_v49  ;;  %v1782_v27 = vld [vmem:[#allocation20_spill] sm:$0xff]  ;;  %v572_v54 = vmul.f32 %v569_v10, %v1491_v16  ;;  %v429_v23 = vmul.f32 %v426_v55, %v1452_v42  ;;  %v474_v49 = vld [vmem:[#allocation13 + $0xb0] sm:$0xff] }
  0xce   :  { %v853_v44 = vadd.f32 %v1781_v14, %v829_v17  ;;  %v710_v21 = vadd.f32 %v1618_v24, %v686_v6  ;;  %v548_v17 = vmul.f32 %v545_v18, %v1483_v46  ;;  %v615_v43 = vadd.f32 %v612_v2, %v591_v57  ;;  %v773_v14 = vld [vmem:[#allocation11 + $0x1f0] sm:$0xff]  ;;  %v821_v2 = vld [vmem:[#allocation11 + $0x220] sm:$0xff]  ;;  %v617_v57 = vld [vmem:[#allocation13 + $0x138] sm:$0xff] }
  0xcf   :  { %v732_v24 = vmul.f32 %v1783_v32, %v725_v3  ;;  %v527_v6 = vadd.f32 %v524_v38, %v503_v33  ;;  %v384_v63 = vadd.f32 %v381_v11, %v360_v20  ;;  %v756_v37 = vmul.f32 %v1540_v29, %v749_v34 }
  0xd0   :  { %v866_v26 = vmul.f32 1.1111112, %v853_v44  ;;  %v734_v62 = vadd.f32 %v1621_v36, %v710_v21  ;;  %v639_v18 = vadd.f32 %v636_v41, %v615_v43  ;;  %v797_v44 = vld [vmem:[#allocation11 + $0x208] sm:$0xff]  ;;  %v780_v36 = vmul.f32 %v1544_v40, %v773_v14  ;;  %v641_v21 = vld [vmem:[#allocation13 + $0x150] sm:$0xff] }
  0xd1   :  { %v596_v3 = vmul.f32 %v593_v19, %v1494_v22  ;;  %v551_v41 = vadd.f32 %v548_v17, %v527_v6  ;;  %v665_v43 = vld [vmem:[#allocation13 + $0x168] sm:$0xff]  ;;  %v408_v38 = vadd.f32 %v405_v4, %v384_v63  ;;  %v453_v11 = vmul.f32 %v450_v25, %v1463_v60  ;;  %v355_v4 = vld [vmem:[#allocation13 + $0x40] sm:$0xff]  ;;  %v379_v63 = vld [vmem:[#allocation13 + $0x58] sm:$0xff] }
  0xd2   :  { %v869_v50 = vadd.f32 %v866_v26, %v1782_v27  ;;  %878 = vst [vmem:[#allocation14 + $0x48] sm:$0xff] %v866_v26  ;;  %v758_v7 = vadd.f32 %v1627_v56, %v734_v62  ;;  %v663_v10 = vadd.f32 %v660_v31, %v639_v18  ;;  %v845_v26 = vld [vmem:[#allocation11 + $0x238] sm:$0xff]  ;;  %v804_v33 = vmul.f32 %v1552_v52, %v797_v44  ;;  %v498_v14 = vld [vmem:[#allocation13 + $0xc8] sm:$0xff]  ;;  %v310_v27 = vld [vmem:[#allocation13 + $0x10] sm:$0xff] }
  0xd3   :  { %v1684_v56 = vmul.f32 %v1556_v51, %v821_v2  ;;  %v620_v34 = vmul.f32 %v617_v57, %v1497_v39  ;;  %v575_v20 = vadd.f32 %v572_v54, %v551_v41  ;;  %v432_v31 = vadd.f32 %v429_v23, %v408_v38  ;;  %v522_v44 = vld [vmem:[#allocation13 + $0xe0] sm:$0xff] }
  0xd4   :  { %872 = vst [vmem:[#allocation14] sm:$0xff] %v869_v50  ;;  %v782_v55 = vadd.f32 %v1630_v13, %v758_v7  ;;  %v687_v19 = vadd.f32 %v684_v48, %v663_v10  ;;  %v477_v17 = vmul.f32 %v474_v49, %v1469_v61  ;;  %v331_v50 = vld [vmem:[#allocation13 + $0x28] sm:$0xff]  ;;  %v1690_v13 = vmul.f32 %v1560_v59, %v845_v26  ;;  %v689_v48 = vld [vmem:[#allocation13 + $0x180] sm:$0xff]  ;;  %v546_v7 = vld [vmem:[#allocation13 + $0xf8] sm:$0xff] }
  0xd5   :  { %v644_v25 = vmul.f32 %v641_v21, %v1500_v28  ;;  %v668_v18 = vmul.f32 %v665_v43, %v1508_v5  ;;  %v599_v6 = vadd.f32 %v596_v3, %v575_v20  ;;  %v456_v54 = vadd.f32 %v453_v11, %v432_v31  ;;  %v713_v21 = vld [vmem:[#allocation13 + $0x198] sm:$0xff]  ;;  %v403_v3 = vld [vmem:[#allocation13 + $0x70] sm:$0xff]  ;;  %v1784_v11 = vld [vmem:[#allocation21_spill] sm:$0xff] }
  0xd6   :  { %v806_v62 = vadd.f32 %v1636_v9, %v782_v55  ;;  %v711_v2 = vadd.f32 %v708_v45, %v687_v19  ;;  %v501_v57 = vmul.f32 %v498_v14, %v1476_v35  ;;  %v313_v9 = vmul.f32 %v310_v27, %v1427_v53  ;;  %v570_v14 = vld [vmem:[#allocation13 + $0x110] sm:$0xff]  ;;  %v594_v27 = vld [vmem:[#allocation13 + $0x128] sm:$0xff] }
  0xd7   :  { %v334_v49 = vmul.f32 %v331_v50, %v1430_v47  ;;  %v358_v10 = vmul.f32 %v355_v4, %v1433_v12  ;;  %v623_v41 = vadd.f32 %v620_v34, %v599_v6  ;;  %v480_v43 = vadd.f32 %v477_v17, %v456_v54  ;;  %v737_v47 = vld [vmem:[#allocation13 + $0x1b0] sm:$0xff]  ;;  %v618_v54 = vld [vmem:[#allocation13 + $0x140] sm:$0xff] }
  0xd8   :  { %v830_v23 = vadd.f32 %v1639_v58, %v806_v62  ;;  %v735_v26 = vadd.f32 %v732_v24, %v711_v2  ;;  %v525_v45 = vmul.f32 %v522_v44, %v1479_v30  ;;  %v692_v55 = vmul.f32 %v689_v48, %v1784_v11  ;;  %v427_v24 = vld [vmem:[#allocation13 + $0x88] sm:$0xff] }
  0xd9   :  { %v337_v58 = vadd.f32 %v334_v49, %v313_v9  ;;  %v382_v19 = vmul.f32 %v379_v63, %v1436_v1  ;;  %v647_v20 = vadd.f32 %v644_v25, %v623_v41  ;;  %v504_v31 = vadd.f32 %v501_v57, %v480_v43  ;;  %v761_v44 = vld [vmem:[#allocation13 + $0x1c8] sm:$0xff]  ;;  %v785_v9 = vld [vmem:[#allocation13 + $0x1e0] sm:$0xff] }
  0xda   :  { %v854_v38 = vadd.f32 %v1645_v0, %v830_v23  ;;  %v759_v53 = vadd.f32 %v756_v37, %v735_v26  ;;  %v549_v12 = vmul.f32 %v546_v7, %v1483_v46  ;;  %v716_v17 = vmul.f32 %v713_v21, %v1524_v15  ;;  %v451_v37 = vld [vmem:[#allocation13 + $0xa0] sm:$0xff]  ;;  %v1785_v25 = vld [vmem:[#allocation22_spill] sm:$0xff] }
  0xdb   :  { %v361_v50 = vadd.f32 %v358_v10, %v337_v58  ;;  %v406_v0 = vmul.f32 %v403_v3, %v1446_v8  ;;  %v671_v62 = vadd.f32 %v668_v18, %v647_v20  ;;  %v528_v2 = vadd.f32 %v525_v45, %v504_v31  ;;  %v475_v18 = vld [vmem:[#allocation13 + $0xb8] sm:$0xff]  ;;  %v833_v20 = vld [vmem:[#allocation13 + $0x210] sm:$0xff] }
  0xdc   :  { %v867_v34 = vmul.f32 1.1111112, %v854_v38  ;;  %v783_v4 = vadd.f32 %v780_v36, %v759_v53  ;;  %v573_v1 = vmul.f32 %v570_v14, %v1491_v16  ;;  %v740_v48 = vmul.f32 %v737_v47, %v1783_v32  ;;  %v642_v10 = vld [vmem:[#allocation13 + $0x158] sm:$0xff] }
  0xdd   :  { %v385_v57 = vadd.f32 %v382_v19, %v361_v50  ;;  %v430_v63 = vmul.f32 %v427_v24, %v1452_v42  ;;  %v695_v7 = vadd.f32 %v692_v55, %v671_v62  ;;  %v552_v8 = vadd.f32 %v549_v12, %v528_v2  ;;  %v809_v45 = vld [vmem:[#allocation13 + $0x1f8] sm:$0xff]  ;;  %v666_v55 = vld [vmem:[#allocation13 + $0x170] sm:$0xff]  ;;  %v690_v12 = vld [vmem:[#allocation13 + $0x188] sm:$0xff] }
  0xde   :  { %v870_v6 = vadd.f32 %v867_v34, %v1785_v25  ;;  %879 = vst [vmem:[#allocation14 + $0x50] sm:$0xff] %v867_v34  ;;  %v807_v23 = vadd.f32 %v804_v33, %v783_v4  ;;  %v597_v36 = vmul.f32 %v594_v27, %v1494_v22  ;;  %v764_v49 = vmul.f32 %v761_v44, %v1540_v29  ;;  %v499_v33 = vld [vmem:[#allocation13 + $0xd0] sm:$0xff]  ;;  %v857_v4 = vld [vmem:[#allocation13 + $0x228] sm:$0xff]  ;;  %v714_v62 = vld [vmem:[#allocation13 + $0x1a0] sm:$0xff] }
  0xdf   :  { %v409_v26 = vadd.f32 %v406_v0, %v385_v57  ;;  %v454_v41 = vmul.f32 %v451_v37, %v1463_v60  ;;  %v719_v43 = vadd.f32 %v716_v17, %v695_v7  ;;  %v576_v3 = vadd.f32 %v573_v1, %v552_v8  ;;  %v1786_v1 = vld [vmem:[#allocation24_spill] sm:$0xff] }
  0xe0   :  { %873 = vst [vmem:[#allocation14 + $0x8] sm:$0xff] %v870_v6  ;;  %v831_v21 = vadd.f32 %v1684_v56, %v807_v23  ;;  %v621_v42 = vmul.f32 %v618_v54, %v1497_v39  ;;  %v788_v38 = vmul.f32 %v785_v9, %v1544_v40  ;;  %v478_v58 = vmul.f32 %v475_v18, %v1469_v61  ;;  %v523_v56 = vld [vmem:[#allocation13 + $0xe8] sm:$0xff]  ;;  %v547_v61 = vld [vmem:[#allocation13 + $0x100] sm:$0xff]  ;;  %v738_v54 = vld [vmem:[#allocation13 + $0x1b8] sm:$0xff] }
  0xe1   :  { %v433_v14 = vadd.f32 %v430_v63, %v409_v26  ;;  %v743_v53 = vadd.f32 %v740_v48, %v719_v43  ;;  %v600_v47 = vadd.f32 %v597_v36, %v576_v3  ;;  %v645_v60 = vmul.f32 %v642_v10, %v1500_v28  ;;  %v571_v48 = vld [vmem:[#allocation13 + $0x118] sm:$0xff]  ;;  %v762_v36 = vld [vmem:[#allocation13 + $0x1d0] sm:$0xff]  ;;  %v786_v43 = vld [vmem:[#allocation13 + $0x1e8] sm:$0xff] }
  0xe2   :  { %v855_v19 = vadd.f32 %v1690_v13, %v831_v21  ;;  %v812_v31 = vmul.f32 %v809_v45, %v1552_v52  ;;  %v502_v34 = vmul.f32 %v499_v33, %v1476_v35  ;;  %v669_v0 = vmul.f32 %v666_v55, %v1508_v5  ;;  %v619_v21 = vld [vmem:[#allocation13 + $0x148] sm:$0xff]  ;;  %v810_v55 = vld [vmem:[#allocation13 + $0x200] sm:$0xff] }
  0xe3   :  { %v457_v24 = vadd.f32 %v454_v41, %v433_v14  ;;  %v767_v27 = vadd.f32 %v764_v49, %v743_v53  ;;  %v624_v50 = vadd.f32 %v621_v42, %v600_v47  ;;  %v836_v13 = vmul.f32 %v833_v20, %v1556_v51  ;;  %v667_v53 = vld [vmem:[#allocation13 + $0x178] sm:$0xff] }
  0xe4   :  { %v868_v17 = vmul.f32 1.1111112, %v855_v19  ;;  %v526_v2 = vmul.f32 %v523_v56, %v1479_v30  ;;  %v693_v35 = vmul.f32 %v690_v12, %v1784_v11  ;;  %v550_v63 = vmul.f32 %v547_v61, %v1483_v46  ;;  %v595_v30 = vld [vmem:[#allocation13 + $0x130] sm:$0xff]  ;;  %v834_v20 = vld [vmem:[#allocation13 + $0x218] sm:$0xff] }
  0xe5   :  { %v481_v44 = vadd.f32 %v478_v58, %v457_v24  ;;  %v791_v25 = vadd.f32 %v788_v38, %v767_v27  ;;  %v648_v6 = vadd.f32 %v645_v60, %v624_v50  ;;  %v860_v7 = vmul.f32 %v857_v4, %v1560_v59  ;;  %v643_v38 = vld [vmem:[#allocation13 + $0x160] sm:$0xff]  ;;  %v858_v12 = vld [vmem:[#allocation13 + $0x230] sm:$0xff]  ;;  %v715_v27 = vld [vmem:[#allocation13 + $0x1a8] sm:$0xff] }
  0xe6   :  { %v871_v37 = vadd.f32 %v868_v17, %v1786_v1  ;;  %880 = vst [vmem:[#allocation14 + $0x58] sm:$0xff] %v868_v17  ;;  %v717_v8 = vmul.f32 %v714_v62, %v1524_v15  ;;  %v574_v49 = vmul.f32 %v571_v48, %v1491_v16  ;;  %v741_v41 = vmul.f32 %v738_v54, %v1783_v32  ;;  %v739_v4 = vld [vmem:[#allocation13 + $0x1c0] sm:$0xff]  ;;  %v811_v48 = vld [vmem:[#allocation13 + $0x208] sm:$0xff] }
  0xe7   :  { %v505_v57 = vadd.f32 %v502_v34, %v481_v44  ;;  %v815_v23 = vadd.f32 %v812_v31, %v791_v25  ;;  %v672_v9 = vadd.f32 %v669_v0, %v648_v6  ;;  %v598_v46 = vmul.f32 %v595_v30, %v1494_v22  ;;  %v691_v31 = vld [vmem:[#allocation13 + $0x190] sm:$0xff] }
  0xe8   :  { %874 = vst [vmem:[#allocation14 + $0x10] sm:$0xff] %v871_v37  ;;  %v765_v33 = vmul.f32 %v762_v36, %v1540_v29  ;;  %v622_v58 = vmul.f32 %v619_v21, %v1497_v39  ;;  %v789_v19 = vmul.f32 %v786_v43, %v1544_v40  ;;  %v646_v60 = vmul.f32 %v643_v38, %v1500_v28  ;;  %v787_v25 = vld [vmem:[#allocation13 + $0x1f0] sm:$0xff] }
  0xe9   :  { %v529_v18 = vadd.f32 %v526_v2, %v505_v57  ;;  %v839_v10 = vadd.f32 %v836_v13, %v815_v23  ;;  %v696_v26 = vadd.f32 %v693_v35, %v672_v9  ;;  %v813_v22 = vmul.f32 %v810_v55, %v1552_v52  ;;  %v763_v2 = vld [vmem:[#allocation13 + $0x1d8] sm:$0xff]  ;;  %v835_v57 = vld [vmem:[#allocation13 + $0x220] sm:$0xff] }
  0xea   :  { %v670_v34 = vmul.f32 %v667_v53, %v1508_v5  ;;  %v837_v39 = vmul.f32 %v834_v20, %v1556_v51  ;;  %v694_v0 = vmul.f32 %v691_v31, %v1784_v11  ;;  %v861_v13 = vmul.f32 %v858_v12, %v1560_v59 }
  0xeb   :  { %v553_v45 = vadd.f32 %v550_v63, %v529_v18  ;;  %v863_v3 = vadd.f32 %v860_v7, %v839_v10  ;;  %v720_v42 = vadd.f32 %v717_v8, %v696_v26  ;;  %v718_v62 = vmul.f32 %v715_v27, %v1524_v15  ;;  %v859_v15 = vld [vmem:[#allocation13 + $0x238] sm:$0xff] }
  0xec   :  { %v742_v37 = vmul.f32 %v739_v4, %v1783_v32  ;;  %v766_v35 = vmul.f32 %v763_v2, %v1540_v29  ;;  %v790_v54 = vmul.f32 %v787_v25, %v1544_v40  ;;  %v814_v23 = vmul.f32 %v811_v48, %v1552_v52 }
  0xed   :  { %v577_v14 = vadd.f32 %v574_v49, %v553_v45  ;;  %875 = vst [vmem:[#allocation14 + $0x30] sm:$0xff] %v863_v3  ;;  %v744_v16 = vadd.f32 %v741_v41, %v720_v42  ;;  %v838_v9 = vmul.f32 %v835_v57, %v1556_v51  ;;  %v862_v32 = vmul.f32 %v859_v15, %v1560_v59 }
  0xef   :  { %v601_v47 = vadd.f32 %v598_v46, %v577_v14  ;;  %v768_v56 = vadd.f32 %v765_v33, %v744_v16 }
  0xf1   :  { %v625_v24 = vadd.f32 %v622_v58, %v601_v47  ;;  %v792_v17 = vadd.f32 %v789_v19, %v768_v56 }
  0xf3   :  { %v649_v50 = vadd.f32 %v646_v60, %v625_v24  ;;  %v816_v61 = vadd.f32 %v813_v22, %v792_v17 }
  0xf5   :  { %v673_v28 = vadd.f32 %v670_v34, %v649_v50  ;;  %v840_v44 = vadd.f32 %v837_v39, %v816_v61 }
  0xf7   :  { %v697_v1 = vadd.f32 %v694_v0, %v673_v28  ;;  %v864_v5 = vadd.f32 %v861_v13, %v840_v44 }
  0xf9   :  { %v721_v6 = vadd.f32 %v718_v62, %v697_v1  ;;  %876 = vst [vmem:[#allocation14 + $0x38] sm:$0xff] %v864_v5 }
  0xfb   :  { %v745_v11 = vadd.f32 %v742_v37, %v721_v6 }
  0xfd   :  { %v769_v63 = vadd.f32 %v766_v35, %v745_v11 }
  0xff   :  { %v793_v7 = vadd.f32 %v790_v54, %v769_v63 }
 0x101   :  { %v817_v8 = vadd.f32 %v814_v23, %v793_v7 }
 0x103   :  { %v841_v30 = vadd.f32 %v838_v9, %v817_v8 }
 0x105   :  { %v865_v29 = vadd.f32 %v862_v32, %v841_v30 }
 0x107   :  { %877 = vst [vmem:[#allocation14 + $0x40] sm:$0xff] %v865_v29 }
 0x108   :  { %1076 = shalt.err (!%p1073_p4)
}
 0x109   :  { %s1077_s27 = scalar_lea.hbm %s1770_s7, 1920 }
 0x10a   :  { %p1078_p5 = scmp.ne.s32.totalorder %s1770_s7, %s1077_s27  ;;  %p1081_p6 = scmp.lt.u32.totalorder %s1077_s27, %s1770_s7 }
 0x10c   :  { %p1083_p7 = pnand %p1081_p6, %p1078_p5 }
 0x10e   :  { %1086 = shalt.err (!%p1083_p7)
}
 0x10f   :  { %892 = dma.vmem_to_hbm [thread:$0]  %s887_s16, 1920, %s1770_s7, [#allocation4], %s1099_s13, %s1099_s13, %s1100_s14  }
 0x110   :  { %1095 = dma.done.wait [#allocation4], 1920  }
 0x111   :  { %1096 = vsyncadd [#allocation4], 4294965376 }
 0x112   :  { %896 = vsyncpa [#allocation3], 1 }
 0x113   :  { %897 = vsyncpa [#allocation6], 1 }
 0x114   :  { %898 = vsyncpa [#allocation9], 1 }
 0x115   :  { %899 = vsyncpa [#allocation12], 1 }
 0x116   :  { %900 = vsyncpa [#allocation4], 1 }

</bundles_post_ra>
